<compile_context>
chip_gen: v6e
topology: v6e:2x2x1
jax: 0.10.0
libtpu: 0.0.40
codegen_flags: <defaults>
</compile_context>

<pallas_src>
import jax
import jax.numpy as jnp
from jax.experimental import pallas as pl
from jax.experimental.pallas import tpu as pltpu

STYLE_DIM = 3        # HiDT-style compact style code
HIDDEN = 32          # hidden channels inside HiDT
C_GRID = 3 * 4       # channels after space-to-depth (r=2) of RGB


# ---------------------------------------------------------------------------
# Kernel helpers
# ---------------------------------------------------------------------------
def _zero_border(buf):
    """Zero only the 1-pixel halo of a padded (H+2, W+2, C) VMEM scratch."""
    h2, w2, c = buf.shape
    z_row = jnp.zeros((1, w2, c), buf.dtype)
    z_col = jnp.zeros((h2, 1, c), buf.dtype)
    buf[0:1, :, :] = z_row
    buf[h2 - 1:h2, :, :] = z_row
    buf[:, 0:1, :] = z_col
    buf[:, w2 - 1:w2, :] = z_col


def _im2col(buf, hg, wg):
    """Implicit im2col: concat the 9 shifted SAME-padded views along the
    channel axis -> (Hg*Wg, 9*C), so the conv is one dot with K = 9*C."""
    views = [buf[dh:dh + hg, dw:dw + wg, :]
             for dh in range(3) for dw in range(3)]
    cols = jnp.concatenate(views, axis=2)            # (Hg, Wg, 9*C)
    return cols.reshape(hg * wg, cols.shape[2])      # (HW, 9*C)


# ---------------------------------------------------------------------------
# Fused Pallas kernel: HiDT (conv-ReLU-AdaIN-conv) + Enhancer sub-pixel conv
# ---------------------------------------------------------------------------
def _coreml_fused_kernel(x_ref, w1_ref, b1_ref, gamma_ref, beta_ref,
                         w2_ref, b2_ref, we_ref, be_ref, o_ref,
                         x_pad, h1_pad, h2_pad):
    """One batch element per grid step; all intermediates stay in VMEM.

    x_ref  : (1, Hg, Wg, C_GRID) f32   unpadded gridded content block
    w*_ref : (9*Cin, Cout) bf16        3x3 taps stacked along the K axis
    o_ref  : (1, Hg*Wg, C_GRID) f32    exact-size output (no lane padding)
    """
    hg, wg, cin = x_ref.shape[1], x_ref.shape[2], x_ref.shape[3]
    hid = w1_ref.shape[1]
    cg = w2_ref.shape[1]

    # Zero only the halo; interiors are fully rewritten each step.
    _zero_border(x_pad)
    _zero_border(h1_pad)
    _zero_border(h2_pad)

    # Stage the unpadded input into the zero-bordered scratch (SAME padding).
    x_pad[1:1 + hg, 1:1 + wg, :] = x_ref[0]

    # ---- HiDT encoder: 3x3 conv (one dot, K=9*cin) + bias + ReLU ----------
    p1 = _im2col(x_pad, hg, wg).astype(jnp.bfloat16)          # (HW, 9*cin)
    h = jnp.dot(p1, w1_ref[...], preferred_element_type=jnp.float32)
    h = jnp.maximum(h + b1_ref[...], 0.0)                     # (HW, hid) f32

    # ---- AdaIN: per-(batch, channel) spatial stats, channels on lanes -----
    mean = jnp.mean(h, axis=0, keepdims=True)
    d = h - mean
    var = jnp.mean(d * d, axis=0, keepdims=True)
    h = d * jax.lax.rsqrt(var + 1e-5)
    h = h * gamma_ref[...] + beta_ref[...]

    h1_pad[1:1 + hg, 1:1 + wg, :] = h.reshape(hg, wg, hid)

    # ---- HiDT decoder: 3x3 conv (one dot, K=9*hid) -------------------------
    p2 = _im2col(h1_pad, hg, wg).astype(jnp.bfloat16)         # (HW, 9*hid)
    h2 = jnp.dot(p2, w2_ref[...], preferred_element_type=jnp.float32)
    h2 = h2 + b2_ref[...]                                      # (HW, cg) f32

    h2_pad[1:1 + hg, 1:1 + wg, :] = h2.reshape(hg, wg, cg)

    # ---- Enhancer: sub-pixel 3x3 conv at grid resolution --------------------
    p3 = _im2col(h2_pad, hg, wg).astype(jnp.bfloat16)         # (HW, 9*cg)
    y = jnp.dot(p3, we_ref[...], preferred_element_type=jnp.float32)
    y = y + be_ref[...]                                        # (HW, cg) f32

    o_ref[0] = y.astype(o_ref.dtype)                           # exact-size store


def coreml_fused(xg, gamma, beta, params):
    """xg: (B, Hg, Wg, C_GRID) f32 -> (B, Hg*Wg, C_GRID) f32."""
    B, Hg, Wg, C = xg.shape
    HW = Hg * Wg
    return pl.pallas_call(
        _coreml_fused_kernel,
        out_shape=jax.ShapeDtypeStruct((B, HW, C), jnp.float32),
        grid=(B,),
        in_specs=[
            pl.BlockSpec((1, Hg, Wg, C), lambda b: (b, 0, 0, 0)),   # xg
            pl.BlockSpec((9 * C, HIDDEN), lambda b: (0, 0)),        # w1
            pl.BlockSpec((1, HIDDEN), lambda b: (0, 0)),            # b1
            pl.BlockSpec((1, HIDDEN), lambda b: (0, 0)),            # gamma
            pl.BlockSpec((1, HIDDEN), lambda b: (0, 0)),            # beta
            pl.BlockSpec((9 * HIDDEN, C), lambda b: (0, 0)),        # w2
            pl.BlockSpec((1, C), lambda b: (0, 0)),                 # b2
            pl.BlockSpec((9 * C, C), lambda b: (0, 0)),             # we
            pl.BlockSpec((1, C), lambda b: (0, 0)),                 # be
        ],
        out_specs=pl.BlockSpec((1, HW, C), lambda b: (b, 0, 0)),
        scratch_shapes=[
            pltpu.VMEM((Hg + 2, Wg + 2, C), jnp.float32),       # x_pad
            pltpu.VMEM((Hg + 2, Wg + 2, HIDDEN), jnp.float32),  # h1_pad
            pltpu.VMEM((Hg + 2, Wg + 2, C), jnp.float32),       # h2_pad
        ],
        compiler_params=pltpu.CompilerParams(
            dimension_semantics=("parallel",),
            vmem_limit_bytes=32 * 1024 * 1024),
    )(xg, params["w1"], params["b1"], gamma, beta,
      params["w2"], params["b2"], params["we"], params["be"])


# ---------------------------------------------------------------------------
# Glue (space<->depth rearrangement) in plain JAX
# ---------------------------------------------------------------------------
def space_to_depth(x_nhwc, r=2):
    B, H, W, C = x_nhwc.shape
    x = x_nhwc.reshape(B, H // r, r, W // r, r, C)
    x = jnp.transpose(x, (0, 1, 3, 2, 4, 5))
    return x.reshape(B, H // r, W // r, r * r * C)


def depth_to_space(x_nhwc, r=2):
    B, H, W, C = x_nhwc.shape
    c = C // (r * r)
    x = x_nhwc.reshape(B, H, W, r, r, c)
    x = jnp.transpose(x, (0, 1, 3, 2, 4, 5))
    return x.reshape(B, H * r, W * r, c)


# ---------------------------------------------------------------------------
# Parameters & forward
# ---------------------------------------------------------------------------
def init_params(key):
    ks = jax.random.split(key, 4)
    p = {}
    # HiDT encoder conv: 3x3, C_GRID -> HIDDEN (taps stacked along K axis)
    w1 = jax.random.normal(ks[0], (9, C_GRID, HIDDEN), jnp.float32) * 0.05
    p["w1"] = w1.reshape(9 * C_GRID, HIDDEN).astype(jnp.bfloat16)
    p["b1"] = jnp.zeros((1, HIDDEN), jnp.float32)
    # style MLP: STYLE_DIM -> 2*HIDDEN (gamma, beta for AdaIN) -- plain jnp
    p["ws"] = jax.random.normal(ks[1], (STYLE_DIM, 2 * HIDDEN), jnp.float32) * 0.2
    p["bs"] = jnp.zeros((1, 2 * HIDDEN), jnp.float32)
    # HiDT decoder conv: 3x3, HIDDEN -> C_GRID
    w2 = jax.random.normal(ks[2], (9, HIDDEN, C_GRID), jnp.float32) * 0.05
    p["w2"] = w2.reshape(9 * HIDDEN, C_GRID).astype(jnp.bfloat16)
    p["b2"] = jnp.zeros((1, C_GRID), jnp.float32)
    # Enhancer sub-pixel conv: 3x3 at grid resolution, C_GRID -> C_GRID
    we = jax.random.normal(ks[3], (9, C_GRID, C_GRID), jnp.float32) * 0.1
    p["we"] = we.reshape(9 * C_GRID, C_GRID).astype(jnp.bfloat16)
    p["be"] = jnp.zeros((1, C_GRID), jnp.float32)
    return p


@jax.jit
def coreml_forward(content_nchw, style, params):
    # NCHW -> NHWC
    x = jnp.transpose(content_nchw, (0, 2, 3, 1)).astype(jnp.float32)

    # --- Grid: space-to-depth gridding (glue); SAME-pad now lives in-kernel ---
    xg = space_to_depth(x, 2)                               # (B, Hg, Wg, 12)
    B, Hg, Wg, _ = xg.shape

    # style -> (gamma, beta): tiny MLP, not worth a pallas_call
    gb = style.reshape(1, STYLE_DIM) @ params["ws"] + params["bs"]
    gamma = 1.0 + gb[:, :HIDDEN]                            # (1, HIDDEN)
    beta = gb[:, HIDDEN:]                                   # (1, HIDDEN)

    # --- HiDT + Enhancer: single fused Pallas kernel ---
    out = coreml_fused(xg, gamma, beta, params)             # (B, Hg*Wg, 12)

    # --- Enhancer tail: reshape (no slicing, no padded lanes), merge grid ---
    y = depth_to_space(out.reshape(B, Hg, Wg, C_GRID), 2)   # (B, H, W, 3)

    # NHWC -> NCHW
    return jnp.transpose(y, (0, 3, 1, 2))


if __name__ == "__main__":
    key = jax.random.PRNGKey(0)
    k_content, k_style, k_params = jax.random.split(key, 3)

    content = jax.random.normal(k_content, (2, 3, 16, 16), jnp.float32)   # NCHW
    style_to_transfer = jax.random.normal(k_style, (STYLE_DIM,), jnp.float32)
    params = init_params(k_params)

    out = coreml_forward(content, style_to_transfer, params)
    jax.block_until_ready(out)
    assert out.shape == (2, 3, 16, 16), out.shape
    print("KERNEL_OK")
</pallas_src>

<mosaic_0001>
module attributes {stable_mosaic.version = 11 : i64} {
  func.func @_coreml_fused_kernel(%arg0: i32, %arg1: memref<1x8x8x12xf32, #tpu.memory_space<vmem>>, %arg2: memref<108x32xbf16, #tpu.memory_space<vmem>>, %arg3: memref<1x32xf32, #tpu.memory_space<vmem>>, %arg4: memref<1x32xf32, #tpu.memory_space<vmem>>, %arg5: memref<1x32xf32, #tpu.memory_space<vmem>>, %arg6: memref<288x12xbf16, #tpu.memory_space<vmem>>, %arg7: memref<1x12xf32, #tpu.memory_space<vmem>>, %arg8: memref<108x12xbf16, #tpu.memory_space<vmem>>, %arg9: memref<1x12xf32, #tpu.memory_space<vmem>>, %arg10: memref<1x64x12xf32, #tpu.memory_space<vmem>>, %arg11: memref<10x10x12xf32, #tpu.memory_space<vmem>>, %arg12: memref<10x10x32xf32, #tpu.memory_space<vmem>>, %arg13: memref<10x10x12xf32, #tpu.memory_space<vmem>>) attributes {dimension_semantics = [#tpu.dimension_semantics<parallel>], iteration_bounds = array<i64: 2>, scalar_prefetch = 0 : i64, scratch_operands = 3 : i64, tpu.core_type = #tpu.core_type<tc>, window_params = [{transform_indices = @transform_0, window_bounds = array<i64: 1, 8, 8, 12>}, {pipeline_mode = #tpu.pipeline_mode<synchronous>, transform_indices = @transform_1, window_bounds = array<i64: 108, 32>}, {pipeline_mode = #tpu.pipeline_mode<synchronous>, transform_indices = @transform_2, window_bounds = array<i64: 1, 32>}, {pipeline_mode = #tpu.pipeline_mode<synchronous>, transform_indices = @transform_3, window_bounds = array<i64: 1, 32>}, {pipeline_mode = #tpu.pipeline_mode<synchronous>, transform_indices = @transform_4, window_bounds = array<i64: 1, 32>}, {pipeline_mode = #tpu.pipeline_mode<synchronous>, transform_indices = @transform_5, window_bounds = array<i64: 288, 12>}, {pipeline_mode = #tpu.pipeline_mode<synchronous>, transform_indices = @transform_6, window_bounds = array<i64: 1, 12>}, {pipeline_mode = #tpu.pipeline_mode<synchronous>, transform_indices = @transform_7, window_bounds = array<i64: 108, 12>}, {pipeline_mode = #tpu.pipeline_mode<synchronous>, transform_indices = @transform_8, window_bounds = array<i64: 1, 12>}, {transform_indices = @transform_9, window_bounds = array<i64: 1, 64, 12>}]} {
    %cst = arith.constant 0.000000e+00 : f32
    %0 = vector.broadcast %cst : f32 to vector<1x10x12xf32>
    %cst_0 = arith.constant 0.000000e+00 : f32
    %1 = vector.broadcast %cst_0 : f32 to vector<10x1x12xf32>
    %c0 = arith.constant 0 : index
    %c0_1 = arith.constant 0 : index
    %c0_2 = arith.constant 0 : index
    %2 = vector.load %arg11[%c0, %c0_1, %c0_2] : memref<10x10x12xf32, #tpu.memory_space<vmem>>, vector<1x10x12xf32>
    tpu.vector_store %arg11[%c0, %c0_1, %c0_2], %0 {strides = array<i32>} : memref<10x10x12xf32, #tpu.memory_space<vmem>>, vector<1x10x12xf32>,
    %c9 = arith.constant 9 : index
    %c0_3 = arith.constant 0 : index
    %c0_4 = arith.constant 0 : index
    %3 = vector.load %arg11[%c9, %c0_3, %c0_4] : memref<10x10x12xf32, #tpu.memory_space<vmem>>, vector<1x10x12xf32>
    tpu.vector_store %arg11[%c9, %c0_3, %c0_4], %0 {strides = array<i32>} : memref<10x10x12xf32, #tpu.memory_space<vmem>>, vector<1x10x12xf32>,
    %c0_5 = arith.constant 0 : index
    %c0_6 = arith.constant 0 : index
    %c0_7 = arith.constant 0 : index
    %4 = vector.load %arg11[%c0_5, %c0_6, %c0_7] : memref<10x10x12xf32, #tpu.memory_space<vmem>>, vector<10x1x12xf32>
    tpu.vector_store %arg11[%c0_5, %c0_6, %c0_7], %1 {strides = array<i32>} : memref<10x10x12xf32, #tpu.memory_space<vmem>>, vector<10x1x12xf32>,
    %c0_8 = arith.constant 0 : index
    %c9_9 = arith.constant 9 : index
    %c0_10 = arith.constant 0 : index
    %5 = vector.load %arg11[%c0_8, %c9_9, %c0_10] : memref<10x10x12xf32, #tpu.memory_space<vmem>>, vector<10x1x12xf32>
    tpu.vector_store %arg11[%c0_8, %c9_9, %c0_10], %1 {strides = array<i32>} : memref<10x10x12xf32, #tpu.memory_space<vmem>>, vector<10x1x12xf32>,
    %cst_11 = arith.constant 0.000000e+00 : f32
    %6 = vector.broadcast %cst_11 : f32 to vector<1x10x32xf32>
    %cst_12 = arith.constant 0.000000e+00 : f32
    %7 = vector.broadcast %cst_12 : f32 to vector<10x1x32xf32>
    %c0_13 = arith.constant 0 : index
    %c0_14 = arith.constant 0 : index
    %c0_15 = arith.constant 0 : index
    %8 = vector.load %arg12[%c0_13, %c0_14, %c0_15] : memref<10x10x32xf32, #tpu.memory_space<vmem>>, vector<1x10x32xf32>
    tpu.vector_store %arg12[%c0_13, %c0_14, %c0_15], %6 {strides = array<i32>} : memref<10x10x32xf32, #tpu.memory_space<vmem>>, vector<1x10x32xf32>,
    %c9_16 = arith.constant 9 : index
    %c0_17 = arith.constant 0 : index
    %c0_18 = arith.constant 0 : index
    %9 = vector.load %arg12[%c9_16, %c0_17, %c0_18] : memref<10x10x32xf32, #tpu.memory_space<vmem>>, vector<1x10x32xf32>
    tpu.vector_store %arg12[%c9_16, %c0_17, %c0_18], %6 {strides = array<i32>} : memref<10x10x32xf32, #tpu.memory_space<vmem>>, vector<1x10x32xf32>,
    %c0_19 = arith.constant 0 : index
    %c0_20 = arith.constant 0 : index
    %c0_21 = arith.constant 0 : index
    %10 = vector.load %arg12[%c0_19, %c0_20, %c0_21] : memref<10x10x32xf32, #tpu.memory_space<vmem>>, vector<10x1x32xf32>
    tpu.vector_store %arg12[%c0_19, %c0_20, %c0_21], %7 {strides = array<i32>} : memref<10x10x32xf32, #tpu.memory_space<vmem>>, vector<10x1x32xf32>,
    %c0_22 = arith.constant 0 : index
    %c9_23 = arith.constant 9 : index
    %c0_24 = arith.constant 0 : index
    %11 = vector.load %arg12[%c0_22, %c9_23, %c0_24] : memref<10x10x32xf32, #tpu.memory_space<vmem>>, vector<10x1x32xf32>
    tpu.vector_store %arg12[%c0_22, %c9_23, %c0_24], %7 {strides = array<i32>} : memref<10x10x32xf32, #tpu.memory_space<vmem>>, vector<10x1x32xf32>,
    %cst_25 = arith.constant 0.000000e+00 : f32
    %12 = vector.broadcast %cst_25 : f32 to vector<1x10x12xf32>
    %cst_26 = arith.constant 0.000000e+00 : f32
    %13 = vector.broadcast %cst_26 : f32 to vector<10x1x12xf32>
    %c0_27 = arith.constant 0 : index
    %c0_28 = arith.constant 0 : index
    %c0_29 = arith.constant 0 : index
    %14 = vector.load %arg13[%c0_27, %c0_28, %c0_29] : memref<10x10x12xf32, #tpu.memory_space<vmem>>, vector<1x10x12xf32>
    tpu.vector_store %arg13[%c0_27, %c0_28, %c0_29], %12 {strides = array<i32>} : memref<10x10x12xf32, #tpu.memory_space<vmem>>, vector<1x10x12xf32>,
    %c9_30 = arith.constant 9 : index
    %c0_31 = arith.constant 0 : index
    %c0_32 = arith.constant 0 : index
    %15 = vector.load %arg13[%c9_30, %c0_31, %c0_32] : memref<10x10x12xf32, #tpu.memory_space<vmem>>, vector<1x10x12xf32>
    tpu.vector_store %arg13[%c9_30, %c0_31, %c0_32], %12 {strides = array<i32>} : memref<10x10x12xf32, #tpu.memory_space<vmem>>, vector<1x10x12xf32>,
    %c0_33 = arith.constant 0 : index
    %c0_34 = arith.constant 0 : index
    %c0_35 = arith.constant 0 : index
    %16 = vector.load %arg13[%c0_33, %c0_34, %c0_35] : memref<10x10x12xf32, #tpu.memory_space<vmem>>, vector<10x1x12xf32>
    tpu.vector_store %arg13[%c0_33, %c0_34, %c0_35], %13 {strides = array<i32>} : memref<10x10x12xf32, #tpu.memory_space<vmem>>, vector<10x1x12xf32>,
    %c0_36 = arith.constant 0 : index
    %c9_37 = arith.constant 9 : index
    %c0_38 = arith.constant 0 : index
    %17 = vector.load %arg13[%c0_36, %c9_37, %c0_38] : memref<10x10x12xf32, #tpu.memory_space<vmem>>, vector<10x1x12xf32>
    tpu.vector_store %arg13[%c0_36, %c9_37, %c0_38], %13 {strides = array<i32>} : memref<10x10x12xf32, #tpu.memory_space<vmem>>, vector<10x1x12xf32>,
    %c0_39 = arith.constant 0 : index
    %c0_40 = arith.constant 0 : index
    %c0_41 = arith.constant 0 : index
    %c0_42 = arith.constant 0 : index
    %18 = vector.load %arg1[%c0_39, %c0_40, %c0_41, %c0_42] : memref<1x8x8x12xf32, #tpu.memory_space<vmem>>, vector<1x8x8x12xf32>
    %19 = vector.shape_cast %18 : vector<1x8x8x12xf32> to vector<8x8x12xf32>
    %c1 = arith.constant 1 : index
    %c1_43 = arith.constant 1 : index
    %c0_44 = arith.constant 0 : index
    %20 = vector.load %arg11[%c1, %c1_43, %c0_44] : memref<10x10x12xf32, #tpu.memory_space<vmem>>, vector<8x8x12xf32>
    tpu.vector_store %arg11[%c1, %c1_43, %c0_44], %19 {strides = array<i32>} : memref<10x10x12xf32, #tpu.memory_space<vmem>>, vector<8x8x12xf32>,
    %c0_45 = arith.constant 0 : index
    %c0_46 = arith.constant 0 : index
    %c0_47 = arith.constant 0 : index
    %21 = vector.load %arg11[%c0_45, %c0_46, %c0_47] : memref<10x10x12xf32, #tpu.memory_space<vmem>>, vector<8x8x12xf32>
    %c0_48 = arith.constant 0 : index
    %c1_49 = arith.constant 1 : index
    %c0_50 = arith.constant 0 : index
    %22 = vector.load %arg11[%c0_48, %c1_49, %c0_50] : memref<10x10x12xf32, #tpu.memory_space<vmem>>, vector<8x8x12xf32>
    %c0_51 = arith.constant 0 : index
    %c2 = arith.constant 2 : index
    %c0_52 = arith.constant 0 : index
    %23 = vector.load %arg11[%c0_51, %c2, %c0_52] : memref<10x10x12xf32, #tpu.memory_space<vmem>>, vector<8x8x12xf32>
    %c1_53 = arith.constant 1 : index
    %c0_54 = arith.constant 0 : index
    %c0_55 = arith.constant 0 : index
    %24 = vector.load %arg11[%c1_53, %c0_54, %c0_55] : memref<10x10x12xf32, #tpu.memory_space<vmem>>, vector<8x8x12xf32>
    %c1_56 = arith.constant 1 : index
    %c1_57 = arith.constant 1 : index
    %c0_58 = arith.constant 0 : index
    %25 = vector.load %arg11[%c1_56, %c1_57, %c0_58] : memref<10x10x12xf32, #tpu.memory_space<vmem>>, vector<8x8x12xf32>
    %c1_59 = arith.constant 1 : index
    %c2_60 = arith.constant 2 : index
    %c0_61 = arith.constant 0 : index
    %26 = vector.load %arg11[%c1_59, %c2_60, %c0_61] : memref<10x10x12xf32, #tpu.memory_space<vmem>>, vector<8x8x12xf32>
    %c2_62 = arith.constant 2 : index
    %c0_63 = arith.constant 0 : index
    %c0_64 = arith.constant 0 : index
    %27 = vector.load %arg11[%c2_62, %c0_63, %c0_64] : memref<10x10x12xf32, #tpu.memory_space<vmem>>, vector<8x8x12xf32>
    %c2_65 = arith.constant 2 : index
    %c1_66 = arith.constant 1 : index
    %c0_67 = arith.constant 0 : index
    %28 = vector.load %arg11[%c2_65, %c1_66, %c0_67] : memref<10x10x12xf32, #tpu.memory_space<vmem>>, vector<8x8x12xf32>
    %c2_68 = arith.constant 2 : index
    %c2_69 = arith.constant 2 : index
    %c0_70 = arith.constant 0 : index
    %29 = vector.load %arg11[%c2_68, %c2_69, %c0_70] : memref<10x10x12xf32, #tpu.memory_space<vmem>>, vector<8x8x12xf32>
    %30 = tpu.concatenate %21, %22, %23, %24, %25, %26, %27, %28, %29 in 2 : vector<8x8x12xf32>, vector<8x8x12xf32>, vector<8x8x12xf32>, vector<8x8x12xf32>, vector<8x8x12xf32>, vector<8x8x12xf32>, vector<8x8x12xf32>, vector<8x8x12xf32>, vector<8x8x12xf32> -> vector<8x8x108xf32>
    %31 = vector.shape_cast %30 : vector<8x8x108xf32> to vector<64x108xf32>
    %32 = arith.truncf %31 : vector<64x108xf32> to vector<64x108xbf16>
    %c0_71 = arith.constant 0 : index
    %c0_72 = arith.constant 0 : index
    %33 = vector.load %arg2[%c0_71, %c0_72] : memref<108x32xbf16, #tpu.memory_space<vmem>>, vector<108x32xbf16>
    %cst_73 = arith.constant dense<0.000000e+00> : vector<64x32xf32>
    %34 = tpu.matmul %32, %33, %cst_73 {dimension_numbers = #tpu.dot_dimension_numbers<[1], [0], [0], [1], [0, 0, 1, 1], [], []>} : vector<64x108xbf16>, vector<108x32xbf16>, vector<64x32xf32> -> vector<64x32xf32>
    %c0_74 = arith.constant 0 : index
    %c0_75 = arith.constant 0 : index
    %35 = vector.load %arg3[%c0_74, %c0_75] : memref<1x32xf32, #tpu.memory_space<vmem>>, vector<1x32xf32>
    %36 = vector.broadcast %35 : vector<1x32xf32> to vector<64x32xf32>
    %37 = arith.addf %34, %36 : vector<64x32xf32>
    %cst_76 = arith.constant 0.000000e+00 : f32
    %38 = vector.broadcast %cst_76 : f32 to vector<64x32xf32>
    %39 = arith.maximumf %37, %38 : vector<64x32xf32>
    %cst_77 = arith.constant dense<0.000000e+00> : vector<32xf32>
    %40 = vector.multi_reduction <add>, %39, %cst_77 [0] : vector<64x32xf32> to vector<32xf32>
    %41 = vector.shape_cast %40 : vector<32xf32> to vector<1x32xf32>
    %cst_78 = arith.constant 6.400000e+01 : f32
    %42 = vector.broadcast %cst_78 : f32 to vector<1x32xf32>
    %43 = arith.divf %41, %42 : vector<1x32xf32>
    %44 = vector.broadcast %43 : vector<1x32xf32> to vector<64x32xf32>
    %45 = arith.subf %39, %44 : vector<64x32xf32>
    %46 = arith.mulf %45, %45 : vector<64x32xf32>
    %cst_79 = arith.constant dense<0.000000e+00> : vector<32xf32>
    %47 = vector.multi_reduction <add>, %46, %cst_79 [0] : vector<64x32xf32> to vector<32xf32>
    %48 = vector.shape_cast %47 : vector<32xf32> to vector<1x32xf32>
    %cst_80 = arith.constant 6.400000e+01 : f32
    %49 = vector.broadcast %cst_80 : f32 to vector<1x32xf32>
    %50 = arith.divf %48, %49 : vector<1x32xf32>
    %cst_81 = arith.constant 9.99999974E-6 : f32
    %51 = vector.broadcast %cst_81 : f32 to vector<1x32xf32>
    %52 = arith.addf %50, %51 : vector<1x32xf32>
    %53 = math.rsqrt %52 : vector<1x32xf32>
    %54 = vector.broadcast %53 : vector<1x32xf32> to vector<64x32xf32>
    %55 = arith.mulf %45, %54 : vector<64x32xf32>
    %c0_82 = arith.constant 0 : index
    %c0_83 = arith.constant 0 : index
    %56 = vector.load %arg4[%c0_82, %c0_83] : memref<1x32xf32, #tpu.memory_space<vmem>>, vector<1x32xf32>
    %57 = vector.broadcast %56 : vector<1x32xf32> to vector<64x32xf32>
    %58 = arith.mulf %55, %57 : vector<64x32xf32>
    %c0_84 = arith.constant 0 : index
    %c0_85 = arith.constant 0 : index
    %59 = vector.load %arg5[%c0_84, %c0_85] : memref<1x32xf32, #tpu.memory_space<vmem>>, vector<1x32xf32>
    %60 = vector.broadcast %59 : vector<1x32xf32> to vector<64x32xf32>
    %61 = arith.addf %58, %60 : vector<64x32xf32>
    %62 = vector.shape_cast %61 : vector<64x32xf32> to vector<8x8x32xf32>
    %c1_86 = arith.constant 1 : index
    %c1_87 = arith.constant 1 : index
    %c0_88 = arith.constant 0 : index
    %63 = vector.load %arg12[%c1_86, %c1_87, %c0_88] : memref<10x10x32xf32, #tpu.memory_space<vmem>>, vector<8x8x32xf32>
    tpu.vector_store %arg12[%c1_86, %c1_87, %c0_88], %62 {strides = array<i32>} : memref<10x10x32xf32, #tpu.memory_space<vmem>>, vector<8x8x32xf32>,
    %c0_89 = arith.constant 0 : index
    %c0_90 = arith.constant 0 : index
    %c0_91 = arith.constant 0 : index
    %64 = vector.load %arg12[%c0_89, %c0_90, %c0_91] : memref<10x10x32xf32, #tpu.memory_space<vmem>>, vector<8x8x32xf32>
    %c0_92 = arith.constant 0 : index
    %c1_93 = arith.constant 1 : index
    %c0_94 = arith.constant 0 : index
    %65 = vector.load %arg12[%c0_92, %c1_93, %c0_94] : memref<10x10x32xf32, #tpu.memory_space<vmem>>, vector<8x8x32xf32>
    %c0_95 = arith.constant 0 : index
    %c2_96 = arith.constant 2 : index
    %c0_97 = arith.constant 0 : index
    %66 = vector.load %arg12[%c0_95, %c2_96, %c0_97] : memref<10x10x32xf32, #tpu.memory_space<vmem>>, vector<8x8x32xf32>
    %c1_98 = arith.constant 1 : index
    %c0_99 = arith.constant 0 : index
    %c0_100 = arith.constant 0 : index
    %67 = vector.load %arg12[%c1_98, %c0_99, %c0_100] : memref<10x10x32xf32, #tpu.memory_space<vmem>>, vector<8x8x32xf32>
    %c1_101 = arith.constant 1 : index
    %c1_102 = arith.constant 1 : index
    %c0_103 = arith.constant 0 : index
    %68 = vector.load %arg12[%c1_101, %c1_102, %c0_103] : memref<10x10x32xf32, #tpu.memory_space<vmem>>, vector<8x8x32xf32>
    %c1_104 = arith.constant 1 : index
    %c2_105 = arith.constant 2 : index
    %c0_106 = arith.constant 0 : index
    %69 = vector.load %arg12[%c1_104, %c2_105, %c0_106] : memref<10x10x32xf32, #tpu.memory_space<vmem>>, vector<8x8x32xf32>
    %c2_107 = arith.constant 2 : index
    %c0_108 = arith.constant 0 : index
    %c0_109 = arith.constant 0 : index
    %70 = vector.load %arg12[%c2_107, %c0_108, %c0_109] : memref<10x10x32xf32, #tpu.memory_space<vmem>>, vector<8x8x32xf32>
    %c2_110 = arith.constant 2 : index
    %c1_111 = arith.constant 1 : index
    %c0_112 = arith.constant 0 : index
    %71 = vector.load %arg12[%c2_110, %c1_111, %c0_112] : memref<10x10x32xf32, #tpu.memory_space<vmem>>, vector<8x8x32xf32>
    %c2_113 = arith.constant 2 : index
    %c2_114 = arith.constant 2 : index
    %c0_115 = arith.constant 0 : index
    %72 = vector.load %arg12[%c2_113, %c2_114, %c0_115] : memref<10x10x32xf32, #tpu.memory_space<vmem>>, vector<8x8x32xf32>
    %73 = tpu.concatenate %64, %65, %66, %67, %68, %69, %70, %71, %72 in 2 : vector<8x8x32xf32>, vector<8x8x32xf32>, vector<8x8x32xf32>, vector<8x8x32xf32>, vector<8x8x32xf32>, vector<8x8x32xf32>, vector<8x8x32xf32>, vector<8x8x32xf32>, vector<8x8x32xf32> -> vector<8x8x288xf32>
    %74 = vector.shape_cast %73 : vector<8x8x288xf32> to vector<64x288xf32>
    %75 = arith.truncf %74 : vector<64x288xf32> to vector<64x288xbf16>
    %c0_116 = arith.constant 0 : index
    %c0_117 = arith.constant 0 : index
    %76 = vector.load %arg6[%c0_116, %c0_117] : memref<288x12xbf16, #tpu.memory_space<vmem>>, vector<288x12xbf16>
    %cst_118 = arith.constant dense<0.000000e+00> : vector<64x12xf32>
    %77 = tpu.matmul %75, %76, %cst_118 {dimension_numbers = #tpu.dot_dimension_numbers<[1], [0], [0], [1], [0, 0, 1, 1], [], []>} : vector<64x288xbf16>, vector<288x12xbf16>, vector<64x12xf32> -> vector<64x12xf32>
    %c0_119 = arith.constant 0 : index
    %c0_120 = arith.constant 0 : index
    %78 = vector.load %arg7[%c0_119, %c0_120] : memref<1x12xf32, #tpu.memory_space<vmem>>, vector<1x12xf32>
    %79 = vector.broadcast %78 : vector<1x12xf32> to vector<64x12xf32>
    %80 = arith.addf %77, %79 : vector<64x12xf32>
    %81 = vector.shape_cast %80 : vector<64x12xf32> to vector<8x8x12xf32>
    %c1_121 = arith.constant 1 : index
    %c1_122 = arith.constant 1 : index
    %c0_123 = arith.constant 0 : index
    %82 = vector.load %arg13[%c1_121, %c1_122, %c0_123] : memref<10x10x12xf32, #tpu.memory_space<vmem>>, vector<8x8x12xf32>
    tpu.vector_store %arg13[%c1_121, %c1_122, %c0_123], %81 {strides = array<i32>} : memref<10x10x12xf32, #tpu.memory_space<vmem>>, vector<8x8x12xf32>,
    %c0_124 = arith.constant 0 : index
    %c0_125 = arith.constant 0 : index
    %c0_126 = arith.constant 0 : index
    %83 = vector.load %arg13[%c0_124, %c0_125, %c0_126] : memref<10x10x12xf32, #tpu.memory_space<vmem>>, vector<8x8x12xf32>
    %c0_127 = arith.constant 0 : index
    %c1_128 = arith.constant 1 : index
    %c0_129 = arith.constant 0 : index
    %84 = vector.load %arg13[%c0_127, %c1_128, %c0_129] : memref<10x10x12xf32, #tpu.memory_space<vmem>>, vector<8x8x12xf32>
    %c0_130 = arith.constant 0 : index
    %c2_131 = arith.constant 2 : index
    %c0_132 = arith.constant 0 : index
    %85 = vector.load %arg13[%c0_130, %c2_131, %c0_132] : memref<10x10x12xf32, #tpu.memory_space<vmem>>, vector<8x8x12xf32>
    %c1_133 = arith.constant 1 : index
    %c0_134 = arith.constant 0 : index
    %c0_135 = arith.constant 0 : index
    %86 = vector.load %arg13[%c1_133, %c0_134, %c0_135] : memref<10x10x12xf32, #tpu.memory_space<vmem>>, vector<8x8x12xf32>
    %c1_136 = arith.constant 1 : index
    %c1_137 = arith.constant 1 : index
    %c0_138 = arith.constant 0 : index
    %87 = vector.load %arg13[%c1_136, %c1_137, %c0_138] : memref<10x10x12xf32, #tpu.memory_space<vmem>>, vector<8x8x12xf32>
    %c1_139 = arith.constant 1 : index
    %c2_140 = arith.constant 2 : index
    %c0_141 = arith.constant 0 : index
    %88 = vector.load %arg13[%c1_139, %c2_140, %c0_141] : memref<10x10x12xf32, #tpu.memory_space<vmem>>, vector<8x8x12xf32>
    %c2_142 = arith.constant 2 : index
    %c0_143 = arith.constant 0 : index
    %c0_144 = arith.constant 0 : index
    %89 = vector.load %arg13[%c2_142, %c0_143, %c0_144] : memref<10x10x12xf32, #tpu.memory_space<vmem>>, vector<8x8x12xf32>
    %c2_145 = arith.constant 2 : index
    %c1_146 = arith.constant 1 : index
    %c0_147 = arith.constant 0 : index
    %90 = vector.load %arg13[%c2_145, %c1_146, %c0_147] : memref<10x10x12xf32, #tpu.memory_space<vmem>>, vector<8x8x12xf32>
    %c2_148 = arith.constant 2 : index
    %c2_149 = arith.constant 2 : index
    %c0_150 = arith.constant 0 : index
    %91 = vector.load %arg13[%c2_148, %c2_149, %c0_150] : memref<10x10x12xf32, #tpu.memory_space<vmem>>, vector<8x8x12xf32>
    %92 = tpu.concatenate %83, %84, %85, %86, %87, %88, %89, %90, %91 in 2 : vector<8x8x12xf32>, vector<8x8x12xf32>, vector<8x8x12xf32>, vector<8x8x12xf32>, vector<8x8x12xf32>, vector<8x8x12xf32>, vector<8x8x12xf32>, vector<8x8x12xf32>, vector<8x8x12xf32> -> vector<8x8x108xf32>
    %93 = vector.shape_cast %92 : vector<8x8x108xf32> to vector<64x108xf32>
    %94 = arith.truncf %93 : vector<64x108xf32> to vector<64x108xbf16>
    %c0_151 = arith.constant 0 : index
    %c0_152 = arith.constant 0 : index
    %95 = vector.load %arg8[%c0_151, %c0_152] : memref<108x12xbf16, #tpu.memory_space<vmem>>, vector<108x12xbf16>
    %cst_153 = arith.constant dense<0.000000e+00> : vector<64x12xf32>
    %96 = tpu.matmul %94, %95, %cst_153 {dimension_numbers = #tpu.dot_dimension_numbers<[1], [0], [0], [1], [0, 0, 1, 1], [], []>} : vector<64x108xbf16>, vector<108x12xbf16>, vector<64x12xf32> -> vector<64x12xf32>
    %c0_154 = arith.constant 0 : index
    %c0_155 = arith.constant 0 : index
    %97 = vector.load %arg9[%c0_154, %c0_155] : memref<1x12xf32, #tpu.memory_space<vmem>>, vector<1x12xf32>
    %98 = vector.broadcast %97 : vector<1x12xf32> to vector<64x12xf32>
    %99 = arith.addf %96, %98 : vector<64x12xf32>
    %c0_156 = arith.constant 0 : index
    %c0_157 = arith.constant 0 : index
    %c0_158 = arith.constant 0 : index
    %100 = vector.load %arg10[%c0_156, %c0_157, %c0_158] : memref<1x64x12xf32, #tpu.memory_space<vmem>>, vector<1x64x12xf32>
    %101 = vector.shape_cast %100 : vector<1x64x12xf32> to vector<64x12xf32>
    %102 = vector.shape_cast %99 : vector<64x12xf32> to vector<1x64x12xf32>
    tpu.vector_store %arg10[%c0_156, %c0_157, %c0_158], %102 {strides = array<i32>} : memref<1x64x12xf32, #tpu.memory_space<vmem>>, vector<1x64x12xf32>,
    return
  }
  func.func @transform_0(%arg0: i32) -> (i32, i32, i32, i32) {
    %c0_i32 = arith.constant 0 : i32
    %c0_i32_0 = arith.constant 0 : i32
    %c0_i32_1 = arith.constant 0 : i32
    %c0_i32_2 = arith.constant 0 : i32
    return %arg0, %c0_i32, %c0_i32_0, %c0_i32_1 : i32, i32, i32, i32
  }
  func.func @transform_1(%arg0: i32) -> (i32, i32) {
    %c0_i32 = arith.constant 0 : i32
    %c0_i32_0 = arith.constant 0 : i32
    %c0_i32_1 = arith.constant 0 : i32
    return %c0_i32, %c0_i32_0 : i32, i32
  }
  func.func @transform_2(%arg0: i32) -> (i32, i32) {
    %c0_i32 = arith.constant 0 : i32
    %c0_i32_0 = arith.constant 0 : i32
    %c0_i32_1 = arith.constant 0 : i32
    return %c0_i32, %c0_i32_0 : i32, i32
  }
  func.func @transform_3(%arg0: i32) -> (i32, i32) {
    %c0_i32 = arith.constant 0 : i32
    %c0_i32_0 = arith.constant 0 : i32
    %c0_i32_1 = arith.constant 0 : i32
    return %c0_i32, %c0_i32_0 : i32, i32
  }
  func.func @transform_4(%arg0: i32) -> (i32, i32) {
    %c0_i32 = arith.constant 0 : i32
    %c0_i32_0 = arith.constant 0 : i32
    %c0_i32_1 = arith.constant 0 : i32
    return %c0_i32, %c0_i32_0 : i32, i32
  }
  func.func @transform_5(%arg0: i32) -> (i32, i32) {
    %c0_i32 = arith.constant 0 : i32
    %c0_i32_0 = arith.constant 0 : i32
    %c0_i32_1 = arith.constant 0 : i32
    return %c0_i32, %c0_i32_0 : i32, i32
  }
  func.func @transform_6(%arg0: i32) -> (i32, i32) {
    %c0_i32 = arith.constant 0 : i32
    %c0_i32_0 = arith.constant 0 : i32
    %c0_i32_1 = arith.constant 0 : i32
    return %c0_i32, %c0_i32_0 : i32, i32
  }
  func.func @transform_7(%arg0: i32) -> (i32, i32) {
    %c0_i32 = arith.constant 0 : i32
    %c0_i32_0 = arith.constant 0 : i32
    %c0_i32_1 = arith.constant 0 : i32
    return %c0_i32, %c0_i32_0 : i32, i32
  }
  func.func @transform_8(%arg0: i32) -> (i32, i32) {
    %c0_i32 = arith.constant 0 : i32
    %c0_i32_0 = arith.constant 0 : i32
    %c0_i32_1 = arith.constant 0 : i32
    return %c0_i32, %c0_i32_0 : i32, i32
  }
  func.func @transform_9(%arg0: i32) -> (i32, i32, i32) {
    %c0_i32 = arith.constant 0 : i32
    %c0_i32_0 = arith.constant 0 : i32
    %c0_i32_1 = arith.constant 0 : i32
    return %arg0, %c0_i32, %c0_i32_0 : i32, i32, i32
  }
}

</mosaic_0001>

<bundles_post_ra>
// kernel: coreml_forward.1
= control target key start
LH: loop header
LB: loop body
LE: loop exit
PB: predicated region body
PF: predicated region fallthrough
CT: control target
= control target key end

     0   :  { %s3078_s30 = smov 0   ;;  %s3861_s0 = inlined_call_operand.vmem [shape: f32[2,8,8,12], index: 0, kind: input, shape index: {}]   ;;  %s3862_s1 = inlined_call_operand.vmem [shape: bf16[108,32], index: 1, kind: input, shape index: {}]   ;;  %s3863_s2 = inlined_call_operand.vmem [shape: f32[1,32], index: 2, kind: input, shape index: {}]   ;;  %s3864_s3 = inlined_call_operand.vmem [shape: f32[1,32], index: 3, kind: input, shape index: {}]   ;;  %s3865_s4 = inlined_call_operand.vmem [shape: f32[1,32], index: 4, kind: input, shape index: {}]   ;;  %s3866_s5 = inlined_call_operand.vmem [shape: bf16[288,12], index: 5, kind: input, shape index: {}]   ;;  %s3867_s6 = inlined_call_operand.vmem [shape: f32[1,12], index: 6, kind: input, shape index: {}]   ;;  %s3868_s7 = inlined_call_operand.vmem [shape: bf16[108,12], index: 7, kind: input, shape index: {}]   ;;  %s3869_s8 = inlined_call_operand.vmem [shape: f32[1,12], index: 8, kind: input, shape index: {}]   ;;  %s3870_s9 = inlined_call_operand.vmem [shape: f32[2,64,12], index: 9, kind: output, shape index: {}]  }
   0x1 LB: > { %s2328_s10 = sadd.s32 4294967295, %s3015_s30   ;;  %p2332_p0 = scmp.ge.s32.totalorder %s3015_s30, 1  ;;  %s3015_s30 = sphi %s3078_s30, %s19_s30  }
   0x2   : > { %p287_p1 = scmp.lt.s32.totalorder %s3015_s30, 3 }
   0x4   : > { %p288_p2 = pnand %p2332_p0, %p287_p1 }
   0x5   : > { %p3088_p3 = scmp.lt.s32.totalorder (!%p288_p2), %s2328_s10, 1  ;;  %s3018_s18 = smov (!%p288_p2), 24  }
   0x6   : > { %291 = sbr.rel (%p288_p2) target bundleno = 1252 (0x4e4), region = 56  ;;  %s3019_s19 = smov (!%p288_p2), 12  }
   0x7   : > { %s3020_s24 = smov (!%p288_p2), 36   ;;  %s3021_s27 = smov (!%p288_p2), 48  }
   0x8   : > { %s3022_s11 = smov (!%p288_p2), 60   ;;  %s3024_s20 = smov (!%p288_p2), 84  }
   0x9   : > { %s3025_s21 = smov (!%p288_p2), 96   ;;  %s3026_s25 = smov (!%p288_p2), 32  }
   0xa   : > { %s3027_s26 = smov (!%p288_p2), 64  }
   0xb   : > { %vm334_vm0 = vcmask 97280   ;;  %vm336_vm1 = vcmask 91136   ;;  %vm341_vm2 = vcmask 90112   ;;  %v3017_v0 = vmov 0.0   ;;  %s3873_s10 = smov (!%p3088_p3, %s2328_s10), 1  ;;  %v2976_v30 = vld [vmem:[%s3862_s1 + $0x28] sm:$0xff]  }
   0xc   : > { %335 = vst.msk [vmem:[#allocation2] sm:$0xff] %vm334_vm0, %v3017_v0  ;;  %339 = vst.msk [vmem:[#allocation2 + $0x90] sm:$0xff] %vm334_vm0, %v3017_v0  ;;  %s2388_s12 = sshll.u32 %s3873_s10, 6  ;;  %v2975_v10 = vld [vmem:[%s3862_s1 + $0x30] sm:$0x3f]   ;;  %vm911_vm3 = vcmask 1045504  }
   0xd   : > { %337 = vst.msk [vmem:[#allocation2 + $0x8] sm:$0x3] %vm336_vm1, %v3017_v0  ;;  %340 = vst.msk [vmem:[#allocation2 + $0x98] sm:$0x3] %vm336_vm1, %v3017_v0  ;;  %s327_s15 = scalar_lea.vmem %s3861_s0, %s2388_s12  ;;  %2514 = vmatprep.subr.msk.bf16.mxu0 %vm911_vm3, %v2975_v10  ;;  %v913_v12 = vsel %vm911_vm3, %v2975_v10, 0  ;;  %v2977_v31 = vld [vmem:[%s3862_s1 + $0x20] sm:$0xff]  }
   0xe   : > { %353 = vst.msk [vmem:[#allocation2 + $0x19] sm:$0x1] %vm341_vm2, %v3017_v0  ;;  %343 = vst.msk [vmem:[#allocation2 + $0x10] sm:$0x1] %vm341_vm2, %v3017_v0  ;;  %v415_v1 = vld [vmem:[%s327_s15] sm:$0xff]  ;;  %v416_v2 = vld [vmem:[%s327_s15 + $0x8] sm:$0xff]  ;;  %2459 = vmatpush3.bf16.msra.mxu0 %v913_v12 }
   0xf   : > { %344 = vst.msk [vmem:[#allocation2 + $0x20] sm:$0x1] %vm341_vm2, %v3017_v0  ;;  %345 = vst.msk [vmem:[#allocation2 + $0x30] sm:$0x1] %vm341_vm2, %v3017_v0  ;;  %v417_v3 = vld [vmem:[%s327_s15 + $0x10] sm:$0xff]  ;;  %v418_v4 = vld [vmem:[%s327_s15 + $0x18] sm:$0xff]  ;;  %2460 = vmatprep.subr.bf16.mxu0 %v2976_v30 }
  0x10   : > { %346 = vst.msk [vmem:[#allocation2 + $0x40] sm:$0x1] %vm341_vm2, %v3017_v0  ;;  %347 = vst.msk [vmem:[#allocation2 + $0x50] sm:$0x1] %vm341_vm2, %v3017_v0  ;;  %v419_v5 = vld [vmem:[%s327_s15 + $0x20] sm:$0xff]  ;;  %v420_v6 = vld [vmem:[%s327_s15 + $0x28] sm:$0xff] }
  0x11   : > { %348 = vst.msk [vmem:[#allocation2 + $0x60] sm:$0x1] %vm341_vm2, %v3017_v0  ;;  %349 = vst.msk [vmem:[#allocation2 + $0x70] sm:$0x1] %vm341_vm2, %v3017_v0  ;;  %v421_v7 = vld [vmem:[%s327_s15 + $0x30] sm:$0xff]  ;;  %v422_v8 = vld [vmem:[%s327_s15 + $0x38] sm:$0xff] }
  0x12   : > { %350 = vst.msk [vmem:[#allocation2 + $0x80] sm:$0x1] %vm341_vm2, %v3017_v0  ;;  %354 = vst.msk [vmem:[#allocation2 + $0x29] sm:$0x1] %vm341_vm2, %v3017_v0  ;;  %2461 = vmatpush3.bf16.msra.mxu0 %v2976_v30  ;;  %v2978_v35 = vld [vmem:[%s3862_s1 + $0x18] sm:$0xff]   ;;  %v2979_v39 = vld [vmem:[%s3862_s1 + $0x10] sm:$0xff]  }
  0x13   : > { %355 = vst.msk [vmem:[#allocation2 + $0x39] sm:$0x1] %vm341_vm2, %v3017_v0  ;;  %356 = vst.msk [vmem:[#allocation2 + $0x49] sm:$0x1] %vm341_vm2, %v3017_v0  ;;  %2462 = vmatprep.subr.bf16.mxu0 %v2977_v31  ;;  %v2980_v43 = vld [vmem:[%s3862_s1 + $0x8] sm:$0xff]   ;;  %s3023_s15 = smov 72  }
  0x14   : > { %357 = vst.msk [vmem:[#allocation2 + $0x59] sm:$0x1] %vm341_vm2, %v3017_v0  ;;  %358 = vst.msk [vmem:[#allocation2 + $0x69] sm:$0x1] %vm341_vm2, %v3017_v0  ;;  %v440_v9 = vld [vmem:[#allocation2 + $0x1] sm:$0xff]  ;;  %vm362_vm4 = vcmask 261120  }
  0x15   : > { %359 = vst.msk [vmem:[#allocation2 + $0x79] sm:$0x1] %vm341_vm2, %v3017_v0  ;;  %360 = vst.msk [vmem:[#allocation2 + $0x89] sm:$0x1] %vm341_vm2, %v3017_v0  ;;  %v2981_v45 = vld [vmem:[%s3862_s1] sm:$0xff]   ;;  %vm769_vm5 = vcmask 195584  }
  0x16   : > { %390 = vst.msk [vmem:[#allocation4] sm:$0xff] %vm334_vm0, %v3017_v0  ;;  %393 = vst.msk [vmem:[#allocation4 + $0x90] sm:$0xff] %vm334_vm0, %v3017_v0  ;;  %2463 = vmatpush3.bf16.msra.mxu0 %v2977_v31  ;;  %vm778_vm6 = vcmask 293888   ;;  %vm787_vm7 = vcmask 392192   ;;  %vm796_vm8 = vcmask 490496   ;;  %vm805_vm9 = vcmask 588800  }
  0x17   : > { %391 = vst.msk [vmem:[#allocation4 + $0x8] sm:$0x3] %vm336_vm1, %v3017_v0  ;;  %394 = vst.msk [vmem:[#allocation4 + $0x98] sm:$0x3] %vm336_vm1, %v3017_v0  ;;  %2464 = vmatprep.subr.bf16.mxu0 %v2978_v35  ;;  %vm814_vm10 = vcmask 687104   ;;  %vm823_vm11 = vcmask 785408  }
  0x18   : > { %396 = vst.msk [vmem:[#allocation4 + $0x10] sm:$0x1] %vm341_vm2, %v3017_v0  ;;  %397 = vst.msk [vmem:[#allocation4 + $0x20] sm:$0x1] %vm341_vm2, %v3017_v0  ;;  %vm898_vm12 = vcmask 883712   ;;  %vm364_vm13 = vcmask 254976  }
  0x19   : > { %398 = vst.msk [vmem:[#allocation4 + $0x30] sm:$0x1] %vm341_vm2, %v3017_v0  ;;  %399 = vst.msk [vmem:[#allocation4 + $0x40] sm:$0x1] %vm341_vm2, %v3017_v0  ;;  %vm369_vm14 = vcmask 253952   ;;  %vm1371_vm15 = vcmask 523264  }
  0x1a   : > { %400 = vst.msk [vmem:[#allocation4 + $0x50] sm:$0x1] %vm341_vm2, %v3017_v0  ;;  %401 = vst.msk [vmem:[#allocation4 + $0x60] sm:$0x1] %vm341_vm2, %v3017_v0  ;;  %2465 = vmatpush3.bf16.msra.mxu0 %v2978_v35 }
  0x1b   : > { %402 = vst.msk [vmem:[#allocation4 + $0x70] sm:$0x1] %vm341_vm2, %v3017_v0  ;;  %403 = vst.msk [vmem:[#allocation4 + $0x80] sm:$0x1] %vm341_vm2, %v3017_v0  ;;  %2466 = vmatprep.subr.bf16.mxu0 %v2979_v39 }
  0x1c   : > { %406 = vst.msk [vmem:[#allocation4 + $0x19] sm:$0x1] %vm341_vm2, %v3017_v0  ;;  %407 = vst.msk [vmem:[#allocation4 + $0x29] sm:$0x1] %vm341_vm2, %v3017_v0 }
  0x1d   : > { %408 = vst.msk [vmem:[#allocation4 + $0x39] sm:$0x1] %vm341_vm2, %v3017_v0  ;;  %409 = vst.msk [vmem:[#allocation4 + $0x49] sm:$0x1] %vm341_vm2, %v3017_v0 }
  0x1e   : > { %410 = vst.msk [vmem:[#allocation4 + $0x59] sm:$0x1] %vm341_vm2, %v3017_v0  ;;  %411 = vst.msk [vmem:[#allocation4 + $0x69] sm:$0x1] %vm341_vm2, %v3017_v0  ;;  %2467 = vmatpush3.bf16.msra.mxu0 %v2979_v39 }
  0x1f   : > { %412 = vst.msk [vmem:[#allocation4 + $0x79] sm:$0x1] %vm341_vm2, %v3017_v0  ;;  %413 = vst.msk [vmem:[#allocation4 + $0x89] sm:$0x1] %vm341_vm2, %v3017_v0  ;;  %2468 = vmatprep.subr.bf16.mxu0 %v2980_v43 }
  0x20   : > { %342 = vst.msk [vmem:[#allocation2] sm:$0x1] %vm341_vm2, %v3017_v0  ;;  %352 = vst.msk [vmem:[#allocation2 + $0x9] sm:$0x1] %vm341_vm2, %v3017_v0 }
  0x21   : > { %351 = vst.msk [vmem:[#allocation2 + $0x90] sm:$0x1] %vm341_vm2, %v3017_v0  ;;  %361 = vst.msk [vmem:[#allocation2 + $0x99] sm:$0x1] %vm341_vm2, %v3017_v0 }
  0x22   : > { %395 = vst.msk [vmem:[#allocation4] sm:$0x1] %vm341_vm2, %v3017_v0  ;;  %404 = vst.msk [vmem:[#allocation4 + $0x90] sm:$0x1] %vm341_vm2, %v3017_v0  ;;  %2469 = vmatpush3.bf16.msra.mxu0 %v2980_v43 }
  0x23   : > { %405 = vst.msk [vmem:[#allocation4 + $0x9] sm:$0x1] %vm341_vm2, %v3017_v0  ;;  %414 = vst.msk [vmem:[#allocation4 + $0x99] sm:$0x1] %vm341_vm2, %v3017_v0  ;;  %2470 = vmatprep.subr.bf16.mxu0 %v2981_v45 }
  0x24   : > { %424 = vst.msk [vmem:[#allocation2 + $0x11] sm:$0xff] %vm334_vm0, %v415_v1  ;;  %425 = vst.msk [vmem:[#allocation2 + $0x21] sm:$0xff] %vm334_vm0, %v416_v2 }
  0x25   : > { %426 = vst.msk [vmem:[#allocation2 + $0x31] sm:$0xff] %vm334_vm0, %v417_v3  ;;  %427 = vst.msk [vmem:[#allocation2 + $0x41] sm:$0xff] %vm334_vm0, %v418_v4 }
  0x26   : > { %428 = vst.msk [vmem:[#allocation2 + $0x51] sm:$0xff] %vm334_vm0, %v419_v5  ;;  %429 = vst.msk [vmem:[#allocation2 + $0x61] sm:$0xff] %vm334_vm0, %v420_v6  ;;  %2471 = vmatpush3.bf16.msra.mxu0 %v2981_v45  ;;  %v496_v5 = vld [vmem:[#allocation2 + $0x91] sm:$0xff] }
  0x27   : > { %430 = vst.msk [vmem:[#allocation2 + $0x71] sm:$0xff] %vm334_vm0, %v421_v7  ;;  %431 = vst.msk [vmem:[#allocation2 + $0x81] sm:$0xff] %vm334_vm0, %v422_v8  ;;  %v448_v11 = vld [vmem:[#allocation2 + $0x2] sm:$0xff] }
  0x28   : > { %v488_v2 = vld [vmem:[#allocation2 + $0x90] sm:$0xff]  ;;  %363 = vst.msk [vmem:[#allocation3] sm:$0xff] %vm362_vm4, %v3017_v0  ;;  %367 = vst.msk [vmem:[#allocation3 + $0x90] sm:$0xff] %vm362_vm4, %v3017_v0 }
  0x29   : > { %v504_v7 = vld [vmem:[#allocation2 + $0x92] sm:$0xff]  ;;  %365 = vst.msk [vmem:[#allocation3 + $0x8] sm:$0x3] %vm364_vm13, %v3017_v0  ;;  %368 = vst.msk [vmem:[#allocation3 + $0x98] sm:$0x3] %vm364_vm13, %v3017_v0 }
  0x2a   : > { %382 = vst.msk [vmem:[#allocation3 + $0x29] sm:$0x1] %vm369_vm14, %v3017_v0  ;;  %383 = vst.msk [vmem:[#allocation3 + $0x39] sm:$0x1] %vm369_vm14, %v3017_v0 }
  0x2b   : > { %v449_v13 = vld [vmem:[#allocation2 + $0x12] sm:$0xff]  ;;  %v450_v15 = vld [vmem:[#allocation2 + $0x22] sm:$0xff]  ;;  %370 = vst.msk [vmem:[#allocation3] sm:$0x1] %vm369_vm14, %v3017_v0  ;;  %371 = vst.msk [vmem:[#allocation3 + $0x10] sm:$0x1] %vm369_vm14, %v3017_v0 }
  0x2c   : > { %v441_v14 = vld [vmem:[#allocation2 + $0x11] sm:$0xff]  ;;  %v2545_v16 = vpack.i.bf16 %v449_v13, %v448_v11  ;;  %v442_v19 = vld [vmem:[#allocation2 + $0x21] sm:$0xff]  ;;  %v2575_v37 = vpack.i.bf16 %v450_v15, %v449_v13  ;;  %372 = vst.msk [vmem:[#allocation3 + $0x20] sm:$0x1] %vm369_vm14, %v3017_v0  ;;  %373 = vst.msk [vmem:[#allocation3 + $0x30] sm:$0x1] %vm369_vm14, %v3017_v0 }
  0x2d   : > { %v2535_v17 = vpack.i.bf16 %v441_v14, %v440_v9  ;;  %v451_v18 = vld [vmem:[#allocation2 + $0x32] sm:$0xff]  ;;  %v3217_v24 = vld [vmem:[#allocation2 + $0x40] sm:$0xff]  ;;  %v2565_v33 = vpack.i.bf16 %v442_v19, %v441_v14  ;;  %374 = vst.msk [vmem:[#allocation3 + $0x40] sm:$0x1] %vm369_vm14, %v3017_v0  ;;  %375 = vst.msk [vmem:[#allocation3 + $0x50] sm:$0x1] %vm369_vm14, %v3017_v0 }
  0x2e   : > { %v443_v20 = vld [vmem:[#allocation2 + $0x31] sm:$0xff]  ;;  %2546 = vrot.lane.b32.xlu1 %v2545_v16, %s3018_s18  ;;  %v2550_v21 = vpack.i.bf16 %v451_v18, %v450_v15  ;;  %v3221_v26 = vld [vmem:[#allocation2 + $0x20] sm:$0xff]  ;;  %376 = vst.msk [vmem:[#allocation3 + $0x60] sm:$0x1] %vm369_vm14, %v3017_v0  ;;  %377 = vst.msk [vmem:[#allocation3 + $0x70] sm:$0x1] %vm369_vm14, %v3017_v0 }
  0x2f   : > { %2536 = vrot.lane.b32.xlu0 %v2535_v17, %s3019_s19  ;;  %v2540_v22 = vpack.i.bf16 %v443_v20, %v442_v19  ;;  %v3215_v23 = vld [vmem:[#allocation2 + $0x30] sm:$0xff]  ;;  %v467_v29 = vld [vmem:[#allocation2 + $0x41] sm:$0xff]  ;;  %378 = vst.msk [vmem:[#allocation3 + $0x80] sm:$0x1] %vm369_vm14, %v3017_v0  ;;  %379 = vst.msk [vmem:[#allocation3 + $0x90] sm:$0x1] %vm369_vm14, %v3017_v0 }
  0x30   : > { %v3219_v25 = vld [vmem:[#allocation2 + $0x10] sm:$0xff]  ;;  %v2560_v27 = vpack.i.bf16 %v3217_v24, %v3215_v23  ;;  %v2570_v32 = vpack.i.bf16 %v467_v29, %v443_v20  ;;  %v475_v34 = vld [vmem:[#allocation2 + $0x42] sm:$0xff]  ;;  %v2585_v41 = vpack.i.bf16 %v3215_v23, %v3221_v26  ;;  %381 = vst.msk [vmem:[#allocation3 + $0x19] sm:$0x1] %vm369_vm14, %v3017_v0  ;;  %384 = vst.msk [vmem:[#allocation3 + $0x49] sm:$0x1] %vm369_vm14, %v3017_v0 }
  0x31   : > { %v2555_v28 = vpack.i.bf16 %v3221_v26, %v3219_v25  ;;  %v2580_v36 = vpack.i.bf16 %v475_v34, %v451_v18  ;;  %v3242_v38 = vld [vmem:[#allocation2 + $0x50] sm:$0xff]  ;;  %v446_v46 = vld [vmem:[#allocation2 + $0x61] sm:$0xff]  ;;  %385 = vst.msk [vmem:[#allocation3 + $0x59] sm:$0x1] %vm369_vm14, %v3017_v0  ;;  %386 = vst.msk [vmem:[#allocation3 + $0x69] sm:$0x1] %vm369_vm14, %v3017_v0 }
  0x32   : > { %2551 = vrot.lane.b32.xlu1 %v2550_v21, %s3018_s18  ;;  %v2590_v40 = vpack.i.bf16 %v3242_v38, %v3217_v24  ;;  %v492_v42 = vld [vmem:[#allocation2 + $0x51] sm:$0xff]  ;;  %v454_v51 = vld [vmem:[#allocation2 + $0x62] sm:$0xff]  ;;  %387 = vst.msk [vmem:[#allocation3 + $0x79] sm:$0x1] %vm369_vm14, %v3017_v0  ;;  %388 = vst.msk [vmem:[#allocation3 + $0x89] sm:$0x1] %vm369_vm14, %v3017_v0 }
  0x33   : > { %2541 = vrot.lane.b32.xlu0 %v2540_v22, %s3019_s19  ;;  %v2600_v44 = vpack.i.bf16 %v492_v42, %v467_v29  ;;  %v447_v47 = vld [vmem:[#allocation2 + $0x71] sm:$0xff]  ;;  %v463_v55 = vld [vmem:[#allocation2 + $0x80] sm:$0xff]  ;;  %v2645_v61 = vpack.i.bf16 %v446_v46, %v492_v42  ;;  %380 = vst.msk [vmem:[#allocation3 + $0x9] sm:$0x1] %vm369_vm14, %v3017_v0  ;;  %389 = vst.msk [vmem:[#allocation3 + $0x99] sm:$0x1] %vm369_vm14, %v3017_v0 }
  0x34   : > { %v500_v48 = vld [vmem:[#allocation2 + $0x52] sm:$0xff]  ;;  %v2620_v49 = vpack.i.bf16 %v447_v47, %v446_v46  ;;  %v3269_v56 = vld [vmem:[#allocation2 + $0x60] sm:$0xff]  ;;  %v2670_v3 = vpack.i.bf16 %v488_v2, %v463_v55 }
  0x35   : > { %v2615_v50 = vpack.i.bf16 %v500_v48, %v475_v34  ;;  %v455_v52 = vld [vmem:[#allocation2 + $0x72] sm:$0xff]  ;;  %v2635_v58 = vpack.i.bf16 %v3269_v56, %v3242_v38  ;;  %v471_v59 = vld [vmem:[#allocation2 + $0x81] sm:$0xff]  ;;  %v2655_v1 = vpack.i.bf16 %v454_v51, %v500_v48 }
  0x36   : > { %2561 = vrot.lane.b32.xlu1 %v2560_v27, %s3020_s24  ;;  %v2630_v53 = vpack.i.bf16 %v455_v52, %v454_v51  ;;  %v3267_v54 = vld [vmem:[#allocation2 + $0x70] sm:$0xff]  ;;  %v2650_v60 = vpack.i.bf16 %v471_v59, %v447_v47  ;;  %v479_v62 = vld [vmem:[#allocation2 + $0x82] sm:$0xff]  ;;  %v2680_v6 = vpack.i.bf16 %v496_v5, %v471_v59 }
  0x37   : > { %2556 = vrot.lane.b32.xlu0 %v2555_v28, %s3020_s24  ;;  %v2640_v57 = vpack.i.bf16 %v463_v55, %v3267_v54  ;;  %v2660_v63 = vpack.i.bf16 %v479_v62, %v455_v52  ;;  %v2665_v4 = vpack.i.bf16 %v3267_v54, %v3269_v56  ;;  %v2690_v8 = vpack.i.bf16 %v504_v7, %v479_v62  ;;  %v432_v19 = vld [vmem:[#allocation2] sm:$0xff] }
  0x3a   : > { %2571 = vrot.lane.b32.xlu1 %v2570_v32, %s3021_s27 }
  0x3b   : > { %2566 = vrot.lane.b32.xlu0 %v2565_v33, %s3021_s27 }
  0x3e   : > { %2581 = vrot.lane.b32.xlu1 %v2580_v36, %s3022_s11 }
  0x3f   : > { %2576 = vrot.lane.b32.xlu0 %v2575_v37, %s3022_s11 }
  0x42   : > { %2591 = vrot.lane.b32.xlu1 %v2590_v40, %s3023_s15 }
  0x43   : > { %2586 = vrot.lane.b32.xlu0 %v2585_v41, %s3023_s15 }
  0x46   : > { %2601 = vrot.lane.b32.xlu1 %v2600_v44, %s3024_s20 }
  0x47   : > { %2596 = vrot.lane.b32.xlu0 %v2540_v22, %s3024_s20 }
  0x4a   : > { %2611 = vrot.lane.b32.xlu1 %v2600_v44, %s3019_s19 }
  0x4b   : > { %2606 = vrot.lane.b32.xlu0 %v2550_v21, %s3025_s21 }
  0x4e   : > { %2621 = vrot.lane.b32.xlu1 %v2620_v49, %s3019_s19 }
  0x4f   : > { %2616 = vrot.lane.b32.xlu0 %v2615_v50, %s3025_s21 }
  0x52   : > { %2631 = vrot.lane.b32.xlu1 %v2630_v53, %s3018_s18 }
  0x53   : > { %2626 = vrot.lane.b32.xlu0 %v2615_v50, %s3018_s18 }
  0x56   : > { %2641 = vrot.lane.b32.xlu1 %v2640_v57, %s3020_s24 }
  0x57   : > { %2636 = vrot.lane.b32.xlu0 %v2635_v58, %s3020_s24 }
  0x5a   : > { %2651 = vrot.lane.b32.xlu1 %v2650_v60, %s3021_s27 }
  0x5b   : > { %2646 = vrot.lane.b32.xlu0 %v2645_v61, %s3021_s27 }
  0x5e   : > { %2661 = vrot.lane.b32.xlu1 %v2660_v63, %s3022_s11 }
  0x5f   : > { %2656 = vrot.lane.b32.xlu0 %v2655_v1, %s3022_s11 }
  0x62   : > { %2671 = vrot.lane.b32.xlu1 %v2670_v3, %s3023_s15 }
  0x63   : > { %2666 = vrot.lane.b32.xlu0 %v2665_v4, %s3023_s15 }
  0x66   : > { %2681 = vrot.lane.b32.xlu1 %v2680_v6, %s3024_s20 }
  0x67   : > { %2676 = vrot.lane.b32.xlu0 %v2620_v49, %s3024_s20 }
  0x6a   : > { %2691 = vrot.lane.b32.xlu1 %v2690_v8, %s3025_s21 }
  0x6b   : > { %2686 = vrot.lane.b32.xlu0 %v2630_v53, %s3025_s21 }
  0xa0   : > { %v2547_v9 = vpop.permute.xlu1 %2546 }
  0xa1   : > { %v2537_v10 = vpop.permute.xlu0 %2536  ;;  %v2549_v28 = vunpack.i.h.bf16 %v2547_v9  ;;  %v2548_v29 = vunpack.i.l.bf16 %v2547_v9 }
  0xa2   : > { %v2539_v17 = vunpack.i.h.bf16 %v2537_v10  ;;  %v2538_v18 = vunpack.i.l.bf16 %v2537_v10 }
  0xa4   : > { %v2552_v11 = vpop.permute.xlu1 %2551  ;;  %v761_v30 = vsel %vm334_vm0, %v432_v19, %v2538_v18  ;;  %v762_v31 = vsel %vm334_vm0, %v3219_v25, %v2539_v17 }
  0xa5   : > { %v2542_v12 = vpop.permute.xlu0 %2541  ;;  %v2554_v32 = vunpack.i.h.bf16 %v2552_v11  ;;  %v2553_v33 = vunpack.i.l.bf16 %v2552_v11  ;;  %v770_v43 = vsel %vm769_vm5, %v761_v30, %v2548_v29  ;;  %v771_v25 = vsel %vm769_vm5, %v762_v31, %v2549_v28 }
  0xa6   : > { %v2544_v20 = vunpack.i.h.bf16 %v2542_v12  ;;  %v2543_v21 = vunpack.i.l.bf16 %v2542_v12 }
  0xa8   : > { %v2562_v13 = vpop.permute.xlu1 %2561  ;;  %v764_v34 = vsel %vm334_vm0, %v3215_v23, %v2544_v20  ;;  %v763_v35 = vsel %vm334_vm0, %v3221_v26, %v2543_v21 }
  0xa9   : > { %v2557_v14 = vpop.permute.xlu0 %2556  ;;  %v2564_v36 = vunpack.i.h.bf16 %v2562_v13  ;;  %v2563_v37 = vunpack.i.l.bf16 %v2562_v13  ;;  %v772_v44 = vsel %vm769_vm5, %v763_v35, %v2553_v33  ;;  %v773_v23 = vsel %vm769_vm5, %v764_v34, %v2554_v32 }
  0xaa   : > { %v2559_v41 = vunpack.i.h.bf16 %v2557_v14  ;;  %v2558_v42 = vunpack.i.l.bf16 %v2557_v14 }
  0xab   : > { %v781_v46 = vsel %vm778_vm6, %v772_v44, %v2563_v37  ;;  %v782_v47 = vsel %vm778_vm6, %v773_v23, %v2564_v36 }
  0xac   : > { %v3294_v15 = vpop.permute.xlu1 %2571  ;;  %v779_v52 = vsel %vm778_vm6, %v770_v43, %v2558_v42  ;;  %v780_v53 = vsel %vm778_vm6, %v771_v25, %v2559_v41 }
  0xad   : > { %v2567_v16 = vpop.permute.xlu0 %2566  ;;  %v2574_v58 = vunpack.i.h.bf16 %v3294_v15  ;;  %v2573_v59 = vunpack.i.l.bf16 %v3294_v15 }
  0xae   : > { %v2569_v45 = vunpack.i.h.bf16 %v2567_v16  ;;  %v2568_v26 = vunpack.i.l.bf16 %v2567_v16 }
  0xaf   : > { %v790_v17 = vsel %vm787_vm7, %v781_v46, %v2573_v59  ;;  %v791_v18 = vsel %vm787_vm7, %v782_v47, %v2574_v58 }
  0xb0   : > { %v3296_v22 = vpop.permute.xlu1 %2581  ;;  %v788_v62 = vsel %vm787_vm7, %v779_v52, %v2568_v26  ;;  %v789_v63 = vsel %vm787_vm7, %v780_v53, %v2569_v45 }
  0xb1   : > { %v2577_v27 = vpop.permute.xlu0 %2576  ;;  %v2584_v1 = vunpack.i.h.bf16 %v3296_v22  ;;  %v2583_v2 = vunpack.i.l.bf16 %v3296_v22 }
  0xb2   : > { %v2579_v48 = vunpack.i.h.bf16 %v2577_v27  ;;  %v2578_v49 = vunpack.i.l.bf16 %v2577_v27 }
  0xb3   : > { %v799_v21 = vsel %vm796_vm8, %v790_v17, %v2583_v2  ;;  %v800_v22 = vsel %vm796_vm8, %v791_v18, %v2584_v1 }
  0xb4   : > { %v2592_v39 = vpop.permute.xlu1 %2591  ;;  %v797_v3 = vsel %vm796_vm8, %v788_v62, %v2578_v49  ;;  %v798_v4 = vsel %vm796_vm8, %v789_v63, %v2579_v48 }
  0xb5   : > { %v2587_v40 = vpop.permute.xlu0 %2586  ;;  %v2594_v5 = vunpack.i.h.bf16 %v2592_v39  ;;  %v2593_v6 = vunpack.i.l.bf16 %v2592_v39 }
  0xb6   : > { %v2589_v55 = vunpack.i.h.bf16 %v2587_v40  ;;  %v2588_v57 = vunpack.i.l.bf16 %v2587_v40 }
  0xb7   : > { %v808_v30 = vsel %vm805_vm9, %v799_v21, %v2593_v6  ;;  %v809_v31 = vsel %vm805_vm9, %v800_v22, %v2594_v5 }
  0xb8   : > { %v2602_v50 = vpop.permute.xlu1 %2601  ;;  %v806_v9 = vsel %vm805_vm9, %v797_v3, %v2588_v57  ;;  %v807_v10 = vsel %vm805_vm9, %v798_v4, %v2589_v55 }
  0xb9   : > { %v2597_v51 = vpop.permute.xlu0 %2596  ;;  %v2604_v13 = vunpack.i.h.bf16 %v2602_v50  ;;  %v2603_v14 = vunpack.i.l.bf16 %v2602_v50 }
  0xba   : > { %v2599_v60 = vunpack.i.h.bf16 %v2597_v51  ;;  %v2598_v61 = vunpack.i.l.bf16 %v2597_v51 }
  0xbb   : > { %v817_v34 = vsel %vm814_vm10, %v808_v30, %v2603_v14  ;;  %v818_v35 = vsel %vm814_vm10, %v809_v31, %v2604_v13 }
  0xbc   : > { %v2612_v7 = vpop.permute.xlu1 %2611  ;;  %v815_v15 = vsel %vm814_vm10, %v806_v9, %v2598_v61  ;;  %v816_v16 = vsel %vm814_vm10, %v807_v10, %v2599_v60 }
  0xbd   : > { %v2607_v8 = vpop.permute.xlu0 %2606  ;;  %v2614_v23 = vunpack.i.h.bf16 %v2612_v7  ;;  %v2613_v45 = vunpack.i.l.bf16 %v2612_v7 }
  0xbe   : > { %v2609_v11 = vunpack.i.h.bf16 %v2607_v8  ;;  %v2608_v12 = vunpack.i.l.bf16 %v2607_v8 }
  0xbf   : > { %v766_v59 = vsel %vm334_vm0, %v3242_v38, %v2614_v23  ;;  %v765_v60 = vsel %vm334_vm0, %v3217_v24, %v2613_v45 }
  0xc0   : > { %v824_v19 = vsel %vm823_vm11, %v815_v15, %v2608_v12  ;;  %v825_v20 = vsel %vm823_vm11, %v816_v16, %v2609_v11  ;;  %v2622_v27 = vpop.permute.xlu1 %2621 }
  0xc1   : > { %v2617_v28 = vpop.permute.xlu0 %2616  ;;  %v832_v29 = vpack.c.bf16 %v825_v20, %v824_v19  ;;  %v2624_v26 = vunpack.i.h.bf16 %v2622_v27  ;;  %v2623_v46 = vunpack.i.l.bf16 %v2622_v27 }
  0xc2   : > { %v2619_v32 = vunpack.i.h.bf16 %v2617_v28  ;;  %v2618_v33 = vunpack.i.l.bf16 %v2617_v28 }
  0xc3   : > { %2472 = vmatprep.mubr.msk.bf16.mxu0 %vm898_vm12, %v832_v29  ;;  %v768_v61 = vsel %vm334_vm0, %v3267_v54, %v2624_v26  ;;  %v767_v62 = vsel %vm334_vm0, %v3269_v56, %v2623_v46 }
  0xc4   : > { %v826_v36 = vsel %vm823_vm11, %v817_v34, %v2618_v33  ;;  %v827_v37 = vsel %vm823_vm11, %v818_v35, %v2619_v32  ;;  %v2632_v40 = vpop.permute.xlu1 %2631 }
  0xc5   : > { %v833_v39 = vpack.c.bf16 %v827_v37, %v826_v36  ;;  %v2627_v41 = vpop.permute.xlu0 %2626  ;;  %v2634_v47 = vunpack.i.h.bf16 %v2632_v40  ;;  %v2633_v48 = vunpack.i.l.bf16 %v2632_v40 }
  0xc6   : > { %v2629_v49 = vunpack.i.h.bf16 %v2627_v41  ;;  %v2628_v50 = vunpack.i.l.bf16 %v2627_v41 }
  0xc7   : > { %2473 = vmatmul.mubr.msk.bf16.vlgmr.msra.gmra.mxu0 %vm898_vm12, %v833_v39  ;;  %v776_v63 = vsel %vm769_vm5, %v767_v62, %v2633_v48  ;;  %v777_v1 = vsel %vm769_vm5, %v768_v61, %v2634_v47  ;;  %v2337_v62 = vld [vmem:[%s3863_s2] ss:$0 sm:$0xff] }
  0xc8   : > { %v2642_v42 = vpop.permute.xlu1 %2641  ;;  %v775_v2 = vsel %vm769_vm5, %v766_v59, %v2629_v49  ;;  %v774_v3 = vsel %vm769_vm5, %v765_v60, %v2628_v50 }
  0xc9   : > { %v2637_v43 = vpop.permute.xlu0 %2636  ;;  %v2644_v53 = vunpack.i.h.bf16 %v2642_v42  ;;  %v2643_v55 = vunpack.i.l.bf16 %v2642_v42 }
  0xca   : > { %v2639_v57 = vunpack.i.h.bf16 %v2637_v43  ;;  %v2638_v58 = vunpack.i.l.bf16 %v2637_v43 }
  0xcb   : > { %v785_v8 = vsel %vm778_vm6, %v776_v63, %v2643_v55  ;;  %v786_v54 = vsel %vm778_vm6, %v777_v1, %v2644_v53  ;;  %v2982_v55 = vld [vmem:[%s3866_s5 + $0x88] sm:$0xff]  }
  0xcc   : > { %v2652_v25 = vpop.permute.xlu1 %2651  ;;  %v783_v56 = vsel %vm778_vm6, %v774_v3, %v2638_v58  ;;  %v784_v9 = vsel %vm778_vm6, %v775_v2, %v2639_v57  ;;  %v2983_v57 = vld [vmem:[%s3866_s5 + $0x80] sm:$0xff]   ;;  %2480 = vmatprep.subr.bf16.mxu0 %v2982_v55 }
  0xcd   : > { %v2647_v44 = vpop.permute.xlu0 %2646  ;;  %v2654_v38 = vunpack.i.h.bf16 %v2652_v25  ;;  %v2653_v6 = vunpack.i.l.bf16 %v2652_v25  ;;  %2481 = vmatpush3.bf16.msra.mxu0 %v2982_v55 }
  0xce   : > { %v2649_v7 = vunpack.i.h.bf16 %v2647_v44  ;;  %v2648_v24 = vunpack.i.l.bf16 %v2647_v44  ;;  %2482 = vmatprep.subr.bf16.mxu0 %v2983_v57 }
  0xcf   : > { %v794_v20 = vsel %vm787_vm7, %v785_v8, %v2653_v6  ;;  %v795_v21 = vsel %vm787_vm7, %v786_v54, %v2654_v38 }
  0xd0   : > { %v2662_v51 = vpop.permute.xlu1 %2661  ;;  %v792_v22 = vsel %vm787_vm7, %v783_v56, %v2648_v24  ;;  %v793_v27 = vsel %vm787_vm7, %v784_v9, %v2649_v7 }
  0xd1   : > { %v2657_v52 = vpop.permute.xlu0 %2656  ;;  %v2664_v10 = vunpack.i.h.bf16 %v2662_v51  ;;  %v2663_v11 = vunpack.i.l.bf16 %v2662_v51  ;;  %2483 = vmatpush3.bf16.msra.mxu0 %v2983_v57 }
  0xd2   : > { %v2659_v12 = vunpack.i.h.bf16 %v2657_v52  ;;  %v2658_v13 = vunpack.i.l.bf16 %v2657_v52 }
  0xd3   : > { %v803_v32 = vsel %vm796_vm8, %v794_v20, %v2663_v11  ;;  %v804_v33 = vsel %vm796_vm8, %v795_v21, %v2664_v10 }
  0xd4   : > { %v2672_v4 = vpop.permute.xlu1 %2671  ;;  %v801_v34 = vsel %vm796_vm8, %v792_v22, %v2658_v13  ;;  %v802_v35 = vsel %vm796_vm8, %v793_v27, %v2659_v12 }
  0xd5   : > { %v2667_v5 = vpop.permute.xlu0 %2666  ;;  %v2674_v14 = vunpack.i.h.bf16 %v2672_v4  ;;  %v2673_v15 = vunpack.i.l.bf16 %v2672_v4 }
  0xd6   : > { %v2669_v16 = vunpack.i.h.bf16 %v2667_v5  ;;  %v2668_v17 = vunpack.i.l.bf16 %v2667_v5 }
  0xd7   : > { %v812_v36 = vsel %vm805_vm9, %v803_v32, %v2673_v15  ;;  %v813_v37 = vsel %vm805_vm9, %v804_v33, %v2674_v14  ;;  %v2984_v32 = vld [vmem:[%s3866_s5 + $0x78] sm:$0xff]  }
  0xd8   : > { %v2682_v18 = vpop.permute.xlu1 %2681  ;;  %v810_v39 = vsel %vm805_vm9, %v801_v34, %v2668_v17  ;;  %v811_v40 = vsel %vm805_vm9, %v802_v35, %v2669_v16  ;;  %v2985_v33 = vld [vmem:[%s3866_s5 + $0x38] sm:$0xff]   ;;  %v2986_v34 = vld [vmem:[%s3866_s5 + $0x70] sm:$0xff]   ;;  %2401 = vmatprep.subr.bf16.mxu1 %v2984_v32 }
  0xd9   : > { %v2677_v19 = vpop.permute.xlu0 %2676  ;;  %v2684_v28 = vunpack.i.h.bf16 %v2682_v18  ;;  %v2683_v29 = vunpack.i.l.bf16 %v2682_v18  ;;  %2402 = vmatpush3.bf16.msra.mxu1 %v2985_v33 }
  0xda   : > { %v2679_v30 = vunpack.i.h.bf16 %v2677_v19  ;;  %v2678_v31 = vunpack.i.l.bf16 %v2677_v19  ;;  %2403 = vmatprep.subr.bf16.mxu1 %v2986_v34 }
  0xdb   : > { %v821_v45 = vsel %vm814_vm10, %v812_v36, %v2683_v29  ;;  %v822_v26 = vsel %vm814_vm10, %v813_v37, %v2684_v28  ;;  %v2987_v37 = vld [vmem:[%s3866_s5 + $0x30] sm:$0xff]  }
  0xdc   : > { %v2692_v41 = vpop.permute.xlu1 %2691  ;;  %v819_v46 = vsel %vm814_vm10, %v810_v39, %v2678_v31  ;;  %v820_v47 = vsel %vm814_vm10, %v811_v40, %v2679_v30  ;;  %v2988_v40 = vld [vmem:[%s3866_s5 + $0x68] sm:$0xff]  }
  0xdd   : > { %v2687_v42 = vpop.permute.xlu0 %2686  ;;  %v2694_v43 = vunpack.i.h.bf16 %v2692_v41  ;;  %v2693_v25 = vunpack.i.l.bf16 %v2692_v41  ;;  %2404 = vmatpush3.bf16.msra.mxu1 %v2987_v37 }
  0xde   : > { %v2689_v44 = vunpack.i.h.bf16 %v2687_v42  ;;  %v2688_v23 = vunpack.i.l.bf16 %v2687_v42  ;;  %v2989_v42 = vld [vmem:[%s3866_s5 + $0x28] sm:$0xff]   ;;  %2405 = vmatprep.subr.bf16.mxu1 %v2988_v40 }
  0xdf   : > { %v830_v48 = vsel %vm823_vm11, %v821_v45, %v2693_v25  ;;  %v831_v49 = vsel %vm823_vm11, %v822_v26, %v2694_v43  ;;  %v2990_v25 = vld [vmem:[%s3866_s5 + $0x60] sm:$0xff]   ;;  %v2992_v26 = vld [vmem:[%s3866_s5 + $0x58] sm:$0xff]  }
  0xe0   : > { %v828_v50 = vsel %vm823_vm11, %v819_v46, %v2688_v23  ;;  %v829_v51 = vsel %vm823_vm11, %v820_v47, %v2689_v44  ;;  %v835_v52 = vpack.c.bf16 %v831_v49, %v830_v48  ;;  %v2991_v23 = vld [vmem:[%s3866_s5 + $0x20] sm:$0xff]   ;;  %v2993_v47 = vld [vmem:[%s3866_s5 + $0x18] sm:$0xff]  }
  0xe1   : > { %v834_v53 = vpack.c.bf16 %v829_v51, %v828_v50  ;;  %2406 = vmatpush3.bf16.msra.mxu1 %v2989_v42 }
  0xe2   : > { %2407 = vmatprep.subr.bf16.mxu1 %v2990_v25 }
  0xe3   : > { %2476 = vmatprep.mubr.msk.bf16.mxu0 %vm898_vm12, %v834_v53 }
  0xe4   : > { %2477 = vmatmul.mubr.msk.bf16.gmra.mxu0 %vm898_vm12, %v835_v52 }
  0xe5   : > { %2408 = vmatpush3.bf16.msra.mxu1 %v2991_v23 }
  0xe6   : > { %2409 = vmatprep.subr.bf16.mxu1 %v2992_v26 }
  0xe9   : > { %2410 = vmatpush3.bf16.msra.mxu1 %v2993_v47 }
 0x187   : > { %v2474_v58 = vpop.f32.mrf.mxu0 }
 0x188   : > { %v958_v3 = vadd.f32 %v2474_v58, %v2337_v62 }
 0x189   : > { %v949_v59 = vpop.f32.mrf.mxu0 }
 0x18a   : > { %v950_v1 = vadd.f32 %v2337_v62, %v949_v59  ;;  %v982_v5 = vmax.f32 %v958_v3, 0.0 }
 0x18b   : > { %v2475_v60 = vpop.f32.mrf.mxu0 }
 0x18c   : > { %v980_v4 = vmax.f32 %v950_v1, 0.0  ;;  %v961_v6 = vadd.f32 %v2475_v60, %v2337_v62  ;;  %v991_v54 = vsel %vm362_vm4, %v982_v5, 0.0 }
 0x18d   : > { %v952_v61 = vpop.f32.mrf.mxu0 }
 0x18e   : > { %v3428_v63 = vadd.f32 %v2337_v62, %v952_v61  ;;  %v988_v38 = vsel %vm362_vm4, %v980_v4, 0.0  ;;  %v983_v56 = vmax.f32 %v961_v6, 0.0 }
 0x190   : > { %v981_v2 = vmax.f32 %v3428_v63, 0.0  ;;  %v993_v15 = vsel %vm362_vm4, %v983_v56, 0.0 }
 0x192   : > { %v989_v0 = vsel %vm362_vm4, %v981_v2, 0.0 }
 0x193   : > { %v990_v7 = vadd.f32 %v989_v0, %v988_v38 }
 0x195   : > { %v992_v10 = vadd.f32 %v991_v54, %v990_v7 }
 0x197   : > { %v994_v19 = vadd.f32 %v993_v15, %v992_v10 }
 0x1a4   : > { %v2478_v24 = vpop.f32.mrf.mxu0 }
 0x1a5   : > { %v974_v12 = vadd.f32 %v2478_v24, %v2337_v62 }
 0x1a6   : > { %v965_v8 = vpop.f32.mrf.mxu0 }
 0x1a7   : > { %v966_v9 = vadd.f32 %v2337_v62, %v965_v8  ;;  %v986_v20 = vmax.f32 %v974_v12, 0.0 }
 0x1a8   : > { %v2479_v11 = vpop.f32.mrf.mxu0 }
 0x1a9   : > { %v984_v13 = vmax.f32 %v966_v9, 0.0  ;;  %v977_v17 = vadd.f32 %v2479_v11, %v2337_v62  ;;  %v999_v30 = vsel %vm362_vm4, %v986_v20, 0.0 }
 0x1aa   : > { %v968_v14 = vpop.f32.mrf.mxu0 }
 0x1ab   : > { %v995_v16 = vsel %vm362_vm4, %v984_v13, 0.0  ;;  %v969_v18 = vadd.f32 %v2337_v62, %v968_v14  ;;  %v987_v27 = vmax.f32 %v977_v17, 0.0 }
 0x1ac   : > { %v996_v22 = vadd.f32 %v995_v16, %v994_v19 }
 0x1ad   : > { %v985_v21 = vmax.f32 %v969_v18, 0.0  ;;  %v1001_v35 = vsel %vm362_vm4, %v987_v27, 0.0 }
 0x1af   : > { %v997_v28 = vsel %vm362_vm4, %v985_v21, 0.0 }
 0x1b0   : > { %v998_v29 = vadd.f32 %v997_v28, %v996_v22 }
 0x1b2   : > { %v1000_v31 = vadd.f32 %v999_v30, %v998_v29 }
 0x1b4   : > { %v1002_v36 = vadd.f32 %v1001_v35, %v1000_v31 }
 0x1b6   : > { %v1003_v39 = vrot.slane %v1002_v36, 4 }
 0x1b8   : > { %v1004_v41 = vadd.f32 %v1003_v39, %v1002_v36  ;;  %v2350_v36 = vld [vmem:[%s3865_s4] ss:$0 sm:$0xff] }
 0x1ba   : > { %v1005_v43 = vrot.slane %v1004_v41, 2 }
 0x1bc   : > { %v1006_v44 = vadd.f32 %v1005_v43, %v1004_v41 }
 0x1be   : > { %v1007_v45 = vrot.slane %v1006_v44, 1 }
 0x1c0   : > { %v1008_v46 = vadd.f32 %v1007_v45, %v1006_v44 }
 0x1c2   : > { %v1010_v48 = vmul.f32 0.015625, %v1008_v46 }
 0x1c4   : > { %v1011_v49 = vsub.f32 %v980_v4, %v1010_v48  ;;  %v1012_v50 = vsub.f32 %v981_v2, %v1010_v48  ;;  %v1013_v51 = vsub.f32 %v982_v5, %v1010_v48  ;;  %v1014_v52 = vsub.f32 %v983_v56, %v1010_v48 }
 0x1c5   : > { %v1015_v53 = vsub.f32 %v984_v13, %v1010_v48  ;;  %v1016_v59 = vsub.f32 %v985_v21, %v1010_v48  ;;  %v1017_v1 = vsub.f32 %v986_v20, %v1010_v48  ;;  %v1018_v2 = vsub.f32 %v987_v27, %v1010_v48  ;;  %v2349_v27 = vld [vmem:[%s3864_s3] ss:$0 sm:$0xff] }
 0x1c6   : > { %v1019_v55 = vmul.f32 %v1011_v49, %v1011_v49  ;;  %v1020_v57 = vmul.f32 %v1012_v50, %v1012_v50  ;;  %v1021_v58 = vmul.f32 %v1013_v51, %v1013_v51  ;;  %v1022_v60 = vmul.f32 %v1014_v52, %v1014_v52 }
 0x1c7   : > { %v1023_v3 = vmul.f32 %v1015_v53, %v1015_v53  ;;  %v1024_v5 = vmul.f32 %v1016_v59, %v1016_v59  ;;  %v1025_v7 = vmul.f32 %v1017_v1, %v1017_v1  ;;  %v1026_v54 = vmul.f32 %v1018_v2, %v1018_v2 }
 0x1c8   : > { %v1027_v61 = vsel %vm362_vm4, %v1019_v55, 0.0  ;;  %v1028_v62 = vsel %vm362_vm4, %v1020_v57, 0.0  ;;  %v1030_v0 = vsel %vm362_vm4, %v1021_v58, 0.0  ;;  %v1032_v38 = vsel %vm362_vm4, %v1022_v60, 0.0  ;;  %v2997_v55 = vld [vmem:[%s3866_s5 + $0x8] sm:$0xff]   ;;  %v2998_v58 = vld [vmem:[%s3866_s5 + $0x40] sm:$0xff]  }
 0x1c9   : > { %v1029_v63 = vadd.f32 %v1028_v62, %v1027_v61  ;;  %v1034_v24 = vsel %vm362_vm4, %v1023_v3, 0.0  ;;  %v1036_v56 = vsel %vm362_vm4, %v1024_v5, 0.0  ;;  %v1038_v10 = vsel %vm362_vm4, %v1025_v7, 0.0  ;;  %v1106_v57 = vld [vmem:[#allocation3 + $0x1] sm:$0xff] }
 0x1ca   : > { %v1040_v12 = vsel %vm362_vm4, %v1026_v54, 0.0  ;;  %v2999_v62 = vld [vmem:[%s3866_s5] sm:$0xff]  }
 0x1cb   : > { %v1031_v4 = vadd.f32 %v1030_v0, %v1029_v63  ;;  %v1114_v54 = vld [vmem:[#allocation3 + $0x2] sm:$0xff] }
 0x1cd   : > { %v1033_v6 = vadd.f32 %v1032_v38, %v1031_v4 }
 0x1cf   : > { %v1035_v8 = vadd.f32 %v1034_v24, %v1033_v6 }
 0x1d1   : > { %v1037_v9 = vadd.f32 %v1036_v56, %v1035_v8 }
 0x1d3   : > { %v1039_v11 = vadd.f32 %v1038_v10, %v1037_v9 }
 0x1d5   : > { %v1041_v13 = vadd.f32 %v1040_v12, %v1039_v11 }
 0x1d7   : > { %v1042_v14 = vrot.slane %v1041_v13, 4 }
 0x1d9   : > { %v1043_v15 = vadd.f32 %v1042_v14, %v1041_v13  ;;  %v1170_v14 = vld [vmem:[#allocation3 + $0x92] sm:$0xff] }
 0x1db   : > { %v1044_v16 = vrot.slane %v1043_v15, 2 }
 0x1dd   : > { %v1045_v17 = vadd.f32 %v1044_v16, %v1043_v15 }
 0x1df   : > { %v1046_v18 = vrot.slane %v1045_v17, 1 }
 0x1e1   : > { %v1047_v19 = vadd.f32 %v1046_v18, %v1045_v17 }
 0x1e3   : > { %v1048_v20 = vmul.f32 0.015625, %v1047_v19 }
 0x1e5   : > { %v1049_v21 = vadd.f32 1e-05, %v1048_v20 }
 0x1e7   : > { %3007 = vrsqrt.f32 %v1049_v21 }
 0x1f4   : > { %v3008_v22 = vpop.eup %3007 }
 0x1f5   : > { %v1051_v28 = vmul.f32 %v3008_v22, %v1011_v49  ;;  %v1052_v29 = vmul.f32 %v3008_v22, %v1012_v50  ;;  %v1053_v30 = vmul.f32 %v3008_v22, %v1013_v51  ;;  %v1054_v31 = vmul.f32 %v3008_v22, %v1014_v52  ;;  %v2994_v51 = vld [vmem:[%s3866_s5 + $0x50] sm:$0xff]  }
 0x1f6   : > { %v1055_v32 = vmul.f32 %v3008_v22, %v1015_v53  ;;  %v1056_v33 = vmul.f32 %v3008_v22, %v1016_v59  ;;  %v1057_v34 = vmul.f32 %v3008_v22, %v1017_v1  ;;  %v1058_v35 = vmul.f32 %v3008_v22, %v1018_v2  ;;  %v2995_v52 = vld [vmem:[%s3866_s5 + $0x10] sm:$0xff]   ;;  %2411 = vmatprep.subr.bf16.mxu1 %v2994_v51  ;;  %v2996_v53 = vld [vmem:[%s3866_s5 + $0x48] sm:$0xff]  }
 0x1f7   : > { %v1066_v37 = vmul.f32 %v2349_v27, %v1051_v28  ;;  %v1067_v39 = vmul.f32 %v2349_v27, %v1052_v29  ;;  %v1068_v40 = vmul.f32 %v2349_v27, %v1053_v30  ;;  %v1069_v41 = vmul.f32 %v2349_v27, %v1054_v31  ;;  %2412 = vmatpush3.bf16.msra.mxu1 %v2995_v52 }
 0x1f8   : > { %v1070_v42 = vmul.f32 %v2349_v27, %v1055_v32  ;;  %v1071_v43 = vmul.f32 %v2349_v27, %v1056_v33  ;;  %v1072_v25 = vmul.f32 %v2349_v27, %v1057_v34  ;;  %v1073_v44 = vmul.f32 %v2349_v27, %v1058_v35  ;;  %2413 = vmatprep.subr.bf16.mxu1 %v2996_v53 }
 0x1f9   : > { %v1081_v23 = vadd.f32 %v2350_v36, %v1066_v37  ;;  %v1082_v45 = vadd.f32 %v2350_v36, %v1067_v39  ;;  %v1083_v26 = vadd.f32 %v2350_v36, %v1068_v40  ;;  %v1084_v46 = vadd.f32 %v2350_v36, %v1069_v41 }
 0x1fa   : > { %v1085_v47 = vadd.f32 %v2350_v36, %v1070_v42  ;;  %v1086_v48 = vadd.f32 %v2350_v36, %v1071_v43  ;;  %v1087_v49 = vadd.f32 %v2350_v36, %v1072_v25  ;;  %v1088_v50 = vadd.f32 %v2350_v36, %v1073_v44  ;;  %v1154_v43 = vld [vmem:[#allocation3 + $0x90] sm:$0xff] }
 0x1fb   : > { %1090 = vst.msk [vmem:[#allocation3 + $0x11] sm:$0xff] %vm362_vm4, %v1081_v23  ;;  %1091 = vst.msk [vmem:[#allocation3 + $0x21] sm:$0xff] %vm362_vm4, %v1082_v45  ;;  %2414 = vmatpush3.bf16.msra.mxu1 %v2997_v55  ;;  %v1162_v45 = vld [vmem:[#allocation3 + $0x91] sm:$0xff] }
 0x1fc   : > { %1092 = vst.msk [vmem:[#allocation3 + $0x31] sm:$0xff] %vm362_vm4, %v1083_v26  ;;  %1093 = vst.msk [vmem:[#allocation3 + $0x41] sm:$0xff] %vm362_vm4, %v1084_v46  ;;  %2415 = vmatprep.subr.bf16.mxu1 %v2998_v58 }
 0x1fd   : > { %1094 = vst.msk [vmem:[#allocation3 + $0x51] sm:$0xff] %vm362_vm4, %v1085_v47  ;;  %1095 = vst.msk [vmem:[#allocation3 + $0x61] sm:$0xff] %vm362_vm4, %v1086_v48 }
 0x1fe   : > { %1096 = vst.msk [vmem:[#allocation3 + $0x71] sm:$0xff] %vm362_vm4, %v1087_v49  ;;  %1097 = vst.msk [vmem:[#allocation3 + $0x81] sm:$0xff] %vm362_vm4, %v1088_v50 }
 0x1ff   : > { %2416 = vmatpush3.bf16.msra.mxu1 %v2999_v62 }
 0x202   : > { %v1163_v59 = vld [vmem:[#allocation3 + $0x22] sm:$0xff]  ;;  %v1138_v61 = vld [vmem:[#allocation3 + $0x12] sm:$0xff] }
 0x203   : > { %v1164_v60 = vld [vmem:[#allocation3 + $0x32] sm:$0xff]  ;;  %v2695_v1 = vpack.i.bf16 %v1163_v59, %v1138_v61  ;;  %v1165_v0 = vld [vmem:[#allocation3 + $0x42] sm:$0xff]  ;;  %v2710_v9 = vpack.i.bf16 %v1138_v61, %v1114_v54 }
 0x204   : > { %v1414_v63 = vpack.c.bf16 %v1164_v60, %v1163_v59  ;;  %v3509_v3 = vld [vmem:[#allocation3 + $0x11] sm:$0xff]  ;;  %v3512_v38 = vld [vmem:[#allocation3 + $0x62] sm:$0xff]  ;;  %v2725_v18 = vpack.i.bf16 %v1165_v0, %v1164_v60  ;;  %v2740_v22 = vpack.i.bf16 %v1164_v60, %v1163_v59 }
 0x205   : > { %v1166_v4 = vld [vmem:[#allocation3 + $0x52] sm:$0xff]  ;;  %v2700_v2 = vpack.i.bf16 %v3509_v3, %v1106_v57  ;;  %v3516_v7 = vld [vmem:[#allocation3 + $0x20] sm:$0xff]  ;;  %2696 = vrot.lane.b32.xlu0 %v2695_v1, %s3026_s25 }
 0x206   : > { %v1417_v5 = vpack.c.bf16 %v1166_v4, %v1165_v0  ;;  %v3514_v6 = vld [vmem:[#allocation3 + $0x72] sm:$0xff]  ;;  %2484 = vmatprep.mubr.msk.bf16.mxu0 %vm362_vm4, %v1414_v63  ;;  %v3529_v10 = vld [vmem:[#allocation3 + $0x21] sm:$0xff]  ;;  %v2755_v31 = vpack.i.bf16 %v3512_v38, %v1166_v4  ;;  %v2770_v35 = vpack.i.bf16 %v1166_v4, %v1165_v0 }
 0x207   : > { %v1420_v24 = vpack.c.bf16 %v3514_v6, %v3512_v38  ;;  %v3522_v8 = vld [vmem:[#allocation3 + $0x30] sm:$0xff]  ;;  %2701 = vrot.lane.b32.xlu1 %v2700_v2, %s3026_s25  ;;  %v1169_v13 = vld [vmem:[#allocation3 + $0x82] sm:$0xff]  ;;  %v2800_v44 = vpack.i.bf16 %v3514_v6, %v3512_v38 }
 0x208   : > { %2485 = vmatmul.mubr.msk.bf16.vlgmr.msra.gmra.mxu0 %vm362_vm4, %v1417_v5  ;;  %v2705_v56 = vpack.i.bf16 %v3522_v8, %v3516_v7  ;;  %v3531_v11 = vld [vmem:[#allocation3 + $0x31] sm:$0xff]  ;;  %v1423_v17 = vpack.c.bf16 %v1170_v14, %v1169_v13  ;;  %v3544_v19 = vld [vmem:[#allocation3 + $0x40] sm:$0xff]  ;;  %v2785_v41 = vpack.i.bf16 %v1169_v13, %v3514_v6 }
 0x209   : > { %2488 = vmatprep.mubr.msk.bf16.mxu0 %vm362_vm4, %v1420_v24  ;;  %v3534_v12 = vld [vmem:[#allocation3 + $0x10] sm:$0xff]  ;;  %v2715_v15 = vpack.i.bf16 %v3531_v11, %v3529_v10  ;;  %v3552_v27 = vld [vmem:[#allocation3 + $0x41] sm:$0xff]  ;;  %v2750_v30 = vpack.i.bf16 %v3544_v19, %v3522_v8 }
 0x20a   : > { %2706 = vrot.lane.b32.xlu0 %v2705_v56, %s3027_s26  ;;  %v2720_v16 = vpack.i.bf16 %v3516_v7, %v3534_v12  ;;  %v3546_v20 = vld [vmem:[#allocation3 + $0x50] sm:$0xff]  ;;  %v3565_v32 = vld [vmem:[#allocation3 + $0x60] sm:$0xff] }
 0x20b   : > { %2711 = vrot.lane.b32.xlu1 %v2710_v9, %s3027_s26  ;;  %v2735_v21 = vpack.i.bf16 %v3546_v20, %v3544_v19  ;;  %v3554_v28 = vld [vmem:[#allocation3 + $0x51] sm:$0xff]  ;;  %v3573_v36 = vld [vmem:[#allocation3 + $0x61] sm:$0xff]  ;;  %v2780_v40 = vpack.i.bf16 %v3565_v32, %v3546_v20 }
 0x20c   : > { %v2745_v29 = vpack.i.bf16 %v3554_v28, %v3552_v27  ;;  %v3567_v33 = vld [vmem:[#allocation3 + $0x70] sm:$0xff]  ;;  %v1153_v42 = vld [vmem:[#allocation3 + $0x80] sm:$0xff] }
 0x20d   : > { %v2765_v34 = vpack.i.bf16 %v3567_v33, %v3565_v32  ;;  %v3575_v37 = vld [vmem:[#allocation3 + $0x71] sm:$0xff]  ;;  %v2795_v25 = vpack.i.bf16 %v1154_v43, %v1153_v42  ;;  %v3590_v23 = vld [vmem:[#allocation3 + $0x81] sm:$0xff]  ;;  %v2810_v46 = vpack.i.bf16 %v1153_v42, %v3567_v33 }
 0x20e   : > { %2716 = vrot.lane.b32.xlu0 %v2715_v15, %s3025_s21  ;;  %v2775_v39 = vpack.i.bf16 %v3575_v37, %v3573_v36  ;;  %v2805_v26 = vpack.i.bf16 %v1162_v45, %v3590_v23  ;;  %v1098_v57 = vld [vmem:[#allocation3] sm:$0xff] }
 0x20f   : > { %2721 = vrot.lane.b32.xlu1 %v2720_v16, %s3025_s21 }
 0x210   : > { %2489 = vmatmul.mubr.msk.bf16.gmra.mxu0 %vm362_vm4, %v1423_v17 }
 0x212   : > { %2726 = vrot.lane.b32.xlu0 %v2725_v18, %s3026_s25 }
 0x213   : > { %2731 = vrot.lane.b32.xlu1 %v2715_v15, %s3026_s25 }
 0x216   : > { %2736 = vrot.lane.b32.xlu0 %v2735_v21, %s3027_s26 }
 0x217   : > { %2741 = vrot.lane.b32.xlu1 %v2740_v22, %s3027_s26 }
 0x21a   : > { %2746 = vrot.lane.b32.xlu0 %v2745_v29, %s3025_s21 }
 0x21b   : > { %2751 = vrot.lane.b32.xlu1 %v2750_v30, %s3025_s21 }
 0x21e   : > { %2756 = vrot.lane.b32.xlu0 %v2755_v31, %s3026_s25 }
 0x21f   : > { %2761 = vrot.lane.b32.xlu1 %v2745_v29, %s3026_s25 }
 0x222   : > { %2766 = vrot.lane.b32.xlu0 %v2765_v34, %s3027_s26 }
 0x223   : > { %2771 = vrot.lane.b32.xlu1 %v2770_v35, %s3027_s26 }
 0x226   : > { %2776 = vrot.lane.b32.xlu0 %v2775_v39, %s3025_s21 }
 0x227   : > { %2781 = vrot.lane.b32.xlu1 %v2780_v40, %s3025_s21 }
 0x22a   : > { %2786 = vrot.lane.b32.xlu0 %v2785_v41, %s3026_s25 }
 0x22b   : > { %2791 = vrot.lane.b32.xlu1 %v2775_v39, %s3026_s25 }
 0x22e   : > { %2796 = vrot.lane.b32.xlu0 %v2795_v25, %s3027_s26 }
 0x22f   : > { %2801 = vrot.lane.b32.xlu1 %v2800_v44, %s3027_s26 }
 0x232   : > { %2806 = vrot.lane.b32.xlu0 %v2805_v26, %s3025_s21 }
 0x233   : > { %2811 = vrot.lane.b32.xlu1 %v2810_v46, %s3025_s21 }
 0x277   : > { %v2697_v47 = vpop.permute.xlu0 %2696 }
 0x278   : > { %v2699_v49 = vunpack.i.h.bf16 %v2697_v47  ;;  %v2698_v50 = vunpack.i.l.bf16 %v2697_v47 }
 0x279   : > { %v2702_v48 = vpop.permute.xlu1 %2701 }
 0x27a   : > { %v2704_v52 = vunpack.i.h.bf16 %v2702_v48  ;;  %v2703_v53 = vunpack.i.l.bf16 %v2702_v48  ;;  %v1388_v63 = vsel %vm362_vm4, %v3509_v3, %v2698_v50  ;;  %v1389_v1 = vsel %vm362_vm4, %v3529_v10, %v2699_v49 }
 0x27c   : > { %v2707_v51 = vpop.permute.xlu0 %2706  ;;  %v1363_v0 = vsel %vm362_vm4, %v1098_v57, %v2703_v53  ;;  %v1364_v4 = vsel %vm362_vm4, %v3534_v12, %v2704_v52 }
 0x27d   : > { %v2712_v55 = vpop.permute.xlu1 %2711  ;;  %v2709_v58 = vunpack.i.h.bf16 %v2707_v51  ;;  %v2708_v59 = vunpack.i.l.bf16 %v2707_v51 }
 0x27e   : > { %v2714_v60 = vunpack.i.h.bf16 %v2712_v55  ;;  %v2713_v61 = vunpack.i.l.bf16 %v2712_v55 }
 0x27f   : > { %v1396_v54 = vsel %vm1371_vm15, %v1388_v63, %v2708_v59  ;;  %v1397_v56 = vsel %vm1371_vm15, %v1389_v1, %v2709_v58 }
 0x280   : > { %v2717_v62 = vpop.permute.xlu0 %2716  ;;  %v1372_v9 = vsel %vm1371_vm15, %v1363_v0, %v2713_v61  ;;  %v1373_v3 = vsel %vm1371_vm15, %v1364_v4, %v2714_v60 }
 0x281   : > { %v2719_v2 = vunpack.i.h.bf16 %v2717_v62  ;;  %v2718_v5 = vunpack.i.l.bf16 %v2717_v62  ;;  %v2722_v38 = vpop.permute.xlu1 %2721 }
 0x282   : > { %v2724_v6 = vunpack.i.h.bf16 %v2722_v38  ;;  %v2723_v24 = vunpack.i.l.bf16 %v2722_v38 }
 0x283   : > { %v1404_v10 = vsel %vm823_vm11, %v1396_v54, %v2718_v5  ;;  %v1405_v13 = vsel %vm823_vm11, %v1397_v56, %v2719_v2 }
 0x284   : > { %v2727_v14 = vpop.permute.xlu0 %2726  ;;  %v1413_v15 = vpack.c.bf16 %v1405_v13, %v1404_v10  ;;  %v1380_v12 = vsel %vm823_vm11, %v1372_v9, %v2723_v24  ;;  %v1381_v16 = vsel %vm823_vm11, %v1373_v3, %v2724_v6 }
 0x285   : > { %v2732_v17 = vpop.permute.xlu1 %2731  ;;  %v1412_v18 = vpack.c.bf16 %v1381_v16, %v1380_v12  ;;  %v2729_v21 = vunpack.i.h.bf16 %v2727_v14  ;;  %v2728_v22 = vunpack.i.l.bf16 %v2727_v14 }
 0x286   : > { %1619 = vmatprep.mubr.bf16.mxu1 %v1413_v15  ;;  %v2734_v30 = vunpack.i.h.bf16 %v2732_v17  ;;  %v2733_v31 = vunpack.i.l.bf16 %v2732_v17 }
 0x287   : > { %1620 = vmatmul.mubr.bf16.vlgmr.msra.gmra.mxu1 %v1412_v18  ;;  %v1391_v42 = vsel %vm362_vm4, %v3552_v27, %v2729_v21  ;;  %v1390_v43 = vsel %vm362_vm4, %v3531_v11, %v2728_v22 }
 0x288   : > { %v2737_v29 = vpop.permute.xlu0 %2736  ;;  %v1366_v44 = vsel %vm362_vm4, %v3522_v8, %v2734_v30  ;;  %v1365_v45 = vsel %vm362_vm4, %v3516_v7, %v2733_v31 }
 0x289   : > { %v2742_v34 = vpop.permute.xlu1 %2741  ;;  %v2739_v35 = vunpack.i.h.bf16 %v2737_v29  ;;  %v2738_v39 = vunpack.i.l.bf16 %v2737_v29 }
 0x28a   : > { %v2744_v40 = vunpack.i.h.bf16 %v2742_v34  ;;  %v2743_v41 = vunpack.i.l.bf16 %v2742_v34 }
 0x28b   : > { %v1398_v48 = vsel %vm1371_vm15, %v1390_v43, %v2738_v39  ;;  %v1399_v49 = vsel %vm1371_vm15, %v1391_v42, %v2739_v35 }
 0x28c   : > { %v2747_v25 = vpop.permute.xlu0 %2746  ;;  %v1374_v27 = vsel %vm1371_vm15, %v1365_v45, %v2743_v41  ;;  %v1375_v11 = vsel %vm1371_vm15, %v1366_v44, %v2744_v40 }
 0x28d   : > { %v2749_v26 = vunpack.i.h.bf16 %v2747_v25  ;;  %v2748_v46 = vunpack.i.l.bf16 %v2747_v25  ;;  %v2752_v47 = vpop.permute.xlu1 %2751 }
 0x28e   : > { %v2754_v50 = vunpack.i.h.bf16 %v2752_v47  ;;  %v2753_v51 = vunpack.i.l.bf16 %v2752_v47 }
 0x28f   : > { %v1406_v52 = vsel %vm823_vm11, %v1398_v48, %v2748_v46  ;;  %v1407_v8 = vsel %vm823_vm11, %v1399_v49, %v2749_v26 }
 0x290   : > { %v2757_v53 = vpop.permute.xlu0 %2756  ;;  %v1416_v55 = vpack.c.bf16 %v1407_v8, %v1406_v52  ;;  %v1382_v7 = vsel %vm823_vm11, %v1374_v27, %v2753_v51  ;;  %v1383_v57 = vsel %vm823_vm11, %v1375_v11, %v2754_v50 }
 0x291   : > { %v2762_v58 = vpop.permute.xlu1 %2761  ;;  %v1415_v59 = vpack.c.bf16 %v1383_v57, %v1382_v7  ;;  %v2759_v60 = vunpack.i.h.bf16 %v2757_v53  ;;  %v2758_v61 = vunpack.i.l.bf16 %v2757_v53 }
 0x292   : > { %1627 = vmatprep.mubr.bf16.mxu1 %v1416_v55  ;;  %v2764_v63 = vunpack.i.h.bf16 %v2762_v58  ;;  %v2763_v1 = vunpack.i.l.bf16 %v2762_v58 }
 0x293   : > { %1628 = vmatmul.mubr.bf16.gmra.mxu1 %v1415_v59  ;;  %v1393_v6 = vsel %vm362_vm4, %v3573_v36, %v2759_v60  ;;  %v1392_v24 = vsel %vm362_vm4, %v3554_v28, %v2758_v61  ;;  %v3664_v61 = vld [vmem:[%s3867_s6] ss:$0 sm:$0xff] }
 0x294   : > { %v2767_v62 = vpop.permute.xlu0 %2766  ;;  %v1368_v56 = vsel %vm362_vm4, %v3546_v20, %v2764_v63  ;;  %v1367_v9 = vsel %vm362_vm4, %v3544_v19, %v2763_v1 }
 0x295   : > { %v2772_v0 = vpop.permute.xlu1 %2771  ;;  %v2769_v4 = vunpack.i.h.bf16 %v2767_v62  ;;  %v2768_v2 = vunpack.i.l.bf16 %v2767_v62 }
 0x296   : > { %v2774_v5 = vunpack.i.h.bf16 %v2772_v0  ;;  %v2773_v38 = vunpack.i.l.bf16 %v2772_v0 }
 0x297   : > { %v1400_v14 = vsel %vm1371_vm15, %v1392_v24, %v2768_v2  ;;  %v1401_v15 = vsel %vm1371_vm15, %v1393_v6, %v2769_v4 }
 0x298   : > { %v2777_v54 = vpop.permute.xlu0 %2776  ;;  %v1376_v36 = vsel %vm1371_vm15, %v1367_v9, %v2773_v38  ;;  %v1377_v28 = vsel %vm1371_vm15, %v1368_v56, %v2774_v5 }
 0x299   : > { %v2779_v3 = vunpack.i.h.bf16 %v2777_v54  ;;  %v2778_v10 = vunpack.i.l.bf16 %v2777_v54  ;;  %v2782_v13 = vpop.permute.xlu1 %2781 }
 0x29a   : > { %v2784_v12 = vunpack.i.h.bf16 %v2782_v13  ;;  %v2783_v16 = vunpack.i.l.bf16 %v2782_v13 }
 0x29b   : > { %v1408_v17 = vsel %vm823_vm11, %v1400_v14, %v2778_v10  ;;  %v1409_v20 = vsel %vm823_vm11, %v1401_v15, %v2779_v3  ;;  %v1734_v3 = vld [vmem:[#allocation4 + $0x1] sm:$0xff] }
 0x29c   : > { %v2787_v18 = vpop.permute.xlu0 %2786  ;;  %v1419_v21 = vpack.c.bf16 %v1409_v20, %v1408_v17  ;;  %v1384_v19 = vsel %vm823_vm11, %v1376_v36, %v2783_v16  ;;  %v1385_v22 = vsel %vm823_vm11, %v1377_v28, %v2784_v12  ;;  %v1742_v36 = vld [vmem:[#allocation4 + $0x2] sm:$0xff] }
 0x29d   : > { %v2792_v29 = vpop.permute.xlu1 %2791  ;;  %v1418_v30 = vpack.c.bf16 %v1385_v22, %v1384_v19  ;;  %v2789_v31 = vunpack.i.h.bf16 %v2787_v18  ;;  %v2788_v34 = vunpack.i.l.bf16 %v2787_v18  ;;  %v3000_v19 = vld [vmem:[%s3868_s7 + $0x30] sm:$0x3f]  }
 0x29e   : > { %1635 = vmatprep.mubr.bf16.mxu1 %v1419_v21  ;;  %v2794_v39 = vunpack.i.h.bf16 %v2792_v29  ;;  %v2793_v40 = vunpack.i.l.bf16 %v2792_v29  ;;  %2515 = vmatprep.subr.msk.bf16.mxu1 %vm911_vm3, %v3000_v19 }
 0x29f   : > { %1636 = vmatmul.mubr.bf16.gmra.mxu1 %v1418_v30  ;;  %v1395_v45 = vsel %vm362_vm4, %v3590_v23, %v2789_v31  ;;  %v1394_v26 = vsel %vm362_vm4, %v3575_v37, %v2788_v34  ;;  %v2198_v31 = vsel %vm911_vm3, %v3000_v19, 0 }
 0x2a0   : > { %v2797_v35 = vpop.permute.xlu0 %2796  ;;  %v1370_v47 = vsel %vm362_vm4, %v3567_v33, %v2794_v39  ;;  %v1369_v48 = vsel %vm362_vm4, %v3565_v32, %v2793_v40  ;;  %2493 = vmatpush3.bf16.msra.mxu1 %v2198_v31  ;;  %v3001_v39 = vld [vmem:[%s3868_s7 + $0x28] sm:$0xff]  }
 0x2a1   : > { %v2802_v41 = vpop.permute.xlu1 %2801  ;;  %v2799_v42 = vunpack.i.h.bf16 %v2797_v35  ;;  %v2798_v43 = vunpack.i.l.bf16 %v2797_v35  ;;  %2494 = vmatprep.subr.bf16.mxu1 %v3001_v39 }
 0x2a2   : > { %v2804_v25 = vunpack.i.h.bf16 %v2802_v41  ;;  %v2803_v44 = vunpack.i.l.bf16 %v2802_v41 }
 0x2a3   : > { %v1402_v27 = vsel %vm1371_vm15, %v1394_v26, %v2798_v43  ;;  %v1403_v11 = vsel %vm1371_vm15, %v1395_v45, %v2799_v42 }
 0x2a4   : > { %v2807_v46 = vpop.permute.xlu0 %2806  ;;  %v1378_v23 = vsel %vm1371_vm15, %v1369_v48, %v2803_v44  ;;  %v1379_v37 = vsel %vm1371_vm15, %v1370_v47, %v2804_v25  ;;  %2495 = vmatpush3.bf16.msra.mxu1 %v3001_v39  ;;  %v3002_v48 = vld [vmem:[%s3868_s7 + $0x20] sm:$0xff]  }
 0x2a5   : > { %v2809_v49 = vunpack.i.h.bf16 %v2807_v46  ;;  %v2808_v50 = vunpack.i.l.bf16 %v2807_v46  ;;  %v2812_v51 = vpop.permute.xlu1 %2811  ;;  %2496 = vmatprep.subr.bf16.mxu1 %v3002_v48 }
 0x2a6   : > { %v2814_v52 = vunpack.i.h.bf16 %v2812_v51  ;;  %v2813_v8 = vunpack.i.l.bf16 %v2812_v51 }
 0x2a7   : > { %v1410_v53 = vsel %vm823_vm11, %v1402_v27, %v2808_v50  ;;  %v1411_v33 = vsel %vm823_vm11, %v1403_v11, %v2809_v49 }
 0x2a8   : > { %v1422_v55 = vpack.c.bf16 %v1411_v33, %v1410_v53  ;;  %v1386_v32 = vsel %vm823_vm11, %v1378_v23, %v2813_v8  ;;  %v1387_v7 = vsel %vm823_vm11, %v1379_v37, %v2814_v52  ;;  %2497 = vmatpush3.bf16.msra.mxu1 %v3002_v48  ;;  %v3003_v53 = vld [vmem:[%s3868_s7 + $0x18] sm:$0xff]  }
 0x2a9   : > { %v1421_v57 = vpack.c.bf16 %v1387_v7, %v1386_v32  ;;  %2498 = vmatprep.subr.bf16.mxu1 %v3003_v53  ;;  %v1798_v48 = vld [vmem:[#allocation4 + $0x92] sm:$0xff] }
 0x2aa   : > { %1643 = vmatprep.mubr.bf16.mxu1 %v1422_v55 }
 0x2ab   : > { %1644 = vmatmul.mubr.bf16.gmra.mxu1 %v1421_v57 }
 0x2ac   : > { %2499 = vmatpush3.bf16.msra.mxu1 %v3003_v53 }
 0x2c8   : > { %v2486_v58 = vpop.f32.mrf.mxu0 }
 0x2ca   : > { %v1686_v60 = vpop.f32.mrf.mxu0 }
 0x2cc   : > { %v2487_v4 = vpop.f32.mrf.mxu0 }
 0x2ce   : > { %v1689_v24 = vpop.f32.mrf.mxu0 }
 0x2d0   : > { %v3677_v22 = vpop.f32.mrf.mxu0 }
 0x2d2   : > { %v1702_v41 = vpop.f32.mrf.mxu0 }
 0x2d4   : > { %v2491_v49 = vpop.f32.mrf.mxu0 }
 0x2d6   : > { %v1705_v33 = vpop.f32.mrf.mxu0 }
 0x347   : > { %v2417_v59 = vpop.f32.mrf.mxu1 }
 0x349   : > { %v2418_v62 = vpop.f32.mrf.mxu1 }
 0x34a   : > { %v2419_v63 = vadd.f32 %v2418_v62, %v2417_v59 }
 0x34b   : > { %v2420_v1 = vpop.f32.mrf.mxu1 }
 0x34c   : > { %v1622_v0 = vadd.f32 %v2419_v63, %v3664_v61 }
 0x34d   : > { %v2421_v2 = vpop.f32.mrf.mxu1 }
 0x34e   : > { %v1687_v5 = vadd.f32 %v1686_v60, %v1622_v0  ;;  %v2422_v38 = vadd.f32 %v2421_v2, %v2420_v1  ;;  %v3004_v60 = vld [vmem:[%s3868_s7 + $0x10] sm:$0xff]  }
 0x34f   : > { %2500 = vmatprep.subr.bf16.mxu1 %v3004_v60 }
 0x350   : > { %1718 = vst.msk [vmem:[#allocation4 + $0x11] sm:$0xff] %vm334_vm0, %v1687_v5  ;;  %v1625_v6 = vadd.f32 %v2422_v38, %v3664_v61  ;;  %2501 = vmatpush3.bf16.msra.mxu1 %v3004_v60  ;;  %v3005_v5 = vld [vmem:[%s3868_s7 + $0x8] sm:$0xff]  }
 0x351   : > { %2502 = vmatprep.subr.bf16.mxu1 %v3005_v5 }
 0x352   : > { %v1690_v54 = vadd.f32 %v1689_v24, %v1625_v6 }
 0x353   : > { %v2423_v56 = vpop.f32.mrf.mxu1 }
 0x354   : > { %1719 = vst.msk [vmem:[#allocation4 + $0x21] sm:$0xff] %vm334_vm0, %v1690_v54  ;;  %2503 = vmatpush3.bf16.msra.mxu1 %v3005_v5 }
 0x355   : > { %v2424_v9 = vpop.f32.mrf.mxu1 }
 0x356   : > { %v2425_v10 = vadd.f32 %v2424_v9, %v2423_v56 }
 0x357   : > { %v2426_v13 = vpop.f32.mrf.mxu1  ;;  %v1735_v14 = vld [vmem:[#allocation4 + $0x11] sm:$0xff] }
 0x358   : > { %v1630_v15 = vadd.f32 %v2425_v10, %v3664_v61  ;;  %v2815_v12 = vpack.i.bf16 %v1735_v14, %v1734_v3  ;;  %v1743_v28 = vld [vmem:[#allocation4 + $0x12] sm:$0xff] }
 0x359   : > { %v2427_v16 = vpop.f32.mrf.mxu1  ;;  %v2820_v21 = vpack.i.bf16 %v1743_v28, %v1742_v36  ;;  %v3684_v35 = vld [vmem:[#allocation4 + $0x10] sm:$0xff] }
 0x35a   : > { %v1695_v17 = vadd.f32 %v2486_v58, %v1630_v15  ;;  %v2428_v20 = vadd.f32 %v2427_v16, %v2426_v13  ;;  %2816 = vrot.lane.b32.xlu0 %v2815_v12, %s3019_s19  ;;  %v3006_v13 = vld [vmem:[%s3868_s7] sm:$0xff]  }
 0x35b   : > { %v3679_v29 = vld [vmem:[#allocation4 + $0x20] sm:$0xff]  ;;  %2504 = vmatprep.subr.bf16.mxu1 %v3006_v13 }
 0x35c   : > { %1720 = vst.msk [vmem:[#allocation4 + $0x31] sm:$0xff] %vm334_vm0, %v1695_v17  ;;  %v1633_v18 = vadd.f32 %v2428_v20, %v3664_v61  ;;  %v2825_v40 = vpack.i.bf16 %v3679_v29, %v3684_v35  ;;  %v1736_v43 = vld [vmem:[#allocation4 + $0x21] sm:$0xff]  ;;  %2505 = vmatpush3.bf16.msra.mxu1 %v3006_v13 }
 0x35d   : > { %v2830_v47 = vpack.i.bf16 %v1736_v43, %v1735_v14  ;;  %v1744_v51 = vld [vmem:[#allocation4 + $0x22] sm:$0xff] }
 0x35e   : > { %v1698_v30 = vadd.f32 %v2487_v4, %v1633_v18  ;;  %2821 = vrot.lane.b32.xlu0 %v2820_v21, %s3018_s18  ;;  %v2835_v37 = vpack.i.bf16 %v1744_v51, %v1743_v28 }
 0x35f   : > { %v2429_v34 = vpop.f32.mrf.mxu1 }
 0x360   : > { %1721 = vst.msk [vmem:[#allocation4 + $0x41] sm:$0xff] %vm334_vm0, %v1698_v30 }
 0x361   : > { %v2430_v42 = vpop.f32.mrf.mxu1 }
 0x362   : > { %v2431_v25 = vadd.f32 %v2430_v42, %v2429_v34  ;;  %2826 = vrot.lane.b32.xlu0 %v2825_v40, %s3020_s24 }
 0x363   : > { %v2432_v44 = vpop.f32.mrf.mxu1  ;;  %v1737_v45 = vld [vmem:[#allocation4 + $0x31] sm:$0xff] }
 0x364   : > { %v1638_v26 = vadd.f32 %v2431_v25, %v3664_v61  ;;  %v2840_v46 = vpack.i.bf16 %v1737_v45, %v1736_v43  ;;  %v1745_v27 = vld [vmem:[#allocation4 + $0x32] sm:$0xff] }
 0x365   : > { %v2433_v50 = vpop.f32.mrf.mxu1  ;;  %v2845_v23 = vpack.i.bf16 %v1745_v27, %v1744_v51  ;;  %v3704_v55 = vld [vmem:[#allocation4 + $0x30] sm:$0xff] }
 0x366   : > { %v1703_v11 = vadd.f32 %v1702_v41, %v1638_v26  ;;  %v2434_v52 = vadd.f32 %v2433_v50, %v2432_v44  ;;  %2841 = vrot.lane.b32.xlu1 %v2840_v46, %s3019_s19  ;;  %2831 = vrot.lane.b32.xlu0 %v2830_v47, %s3021_s27  ;;  %v2850_v59 = vpack.i.bf16 %v3704_v55, %v3679_v29 }
 0x367   : > { %v3706_v32 = vld [vmem:[#allocation4 + $0x40] sm:$0xff] }
 0x368   : > { %1722 = vst.msk [vmem:[#allocation4 + $0x51] sm:$0xff] %vm334_vm0, %v1703_v11  ;;  %v1641_v8 = vadd.f32 %v2434_v52, %v3664_v61  ;;  %v2865_v58 = vpack.i.bf16 %v3706_v32, %v3704_v55  ;;  %v1761_v63 = vld [vmem:[#allocation4 + $0x41] sm:$0xff] }
 0x369   : > { %v2870_v2 = vpack.i.bf16 %v1761_v63, %v1737_v45  ;;  %v1769_v6 = vld [vmem:[#allocation4 + $0x42] sm:$0xff]  ;;  %v1782_v45 = vld [vmem:[#allocation4 + $0x90] sm:$0xff] }
 0x36a   : > { %v1706_v7 = vadd.f32 %v1705_v33, %v1641_v8  ;;  %2846 = vrot.lane.b32.xlu1 %v2845_v23, %s3018_s18  ;;  %2836 = vrot.lane.b32.xlu0 %v2835_v37, %s3022_s11  ;;  %v2875_v9 = vpack.i.bf16 %v1769_v6, %v1745_v27 }
 0x36b   : > { %v2435_v57 = vpop.f32.mrf.mxu1 }
 0x36c   : > { %1723 = vst.msk [vmem:[#allocation4 + $0x61] sm:$0xff] %vm334_vm0, %v1706_v7 }
 0x36d   : > { %v2436_v62 = vpop.f32.mrf.mxu1 }
 0x36e   : > { %v2437_v1 = vadd.f32 %v2436_v62, %v2435_v57  ;;  %2866 = vrot.lane.b32.xlu1 %v2865_v58, %s3020_s24  ;;  %2851 = vrot.lane.b32.xlu0 %v2850_v59, %s3023_s15  ;;  %v1726_v57 = vld [vmem:[#allocation4] sm:$0xff] }
 0x36f   : > { %v2438_v0 = vpop.f32.mrf.mxu1  ;;  %v3729_v3 = vld [vmem:[#allocation4 + $0x50] sm:$0xff] }
 0x370   : > { %v1646_v4 = vadd.f32 %v2437_v1, %v3664_v61  ;;  %v1794_v10 = vld [vmem:[#allocation4 + $0x52] sm:$0xff] }
 0x371   : > { %v2439_v38 = vpop.f32.mrf.mxu1  ;;  %v2895_v15 = vpack.i.bf16 %v1794_v10, %v1769_v6  ;;  %v1786_v12 = vld [vmem:[#allocation4 + $0x51] sm:$0xff] }
 0x372   : > { %v1711_v24 = vadd.f32 %v3677_v22, %v1646_v4  ;;  %v2440_v54 = vadd.f32 %v2439_v38, %v2438_v0  ;;  %2871 = vrot.lane.b32.xlu1 %v2870_v2, %s3021_s27  ;;  %2856 = vrot.lane.b32.xlu0 %v2840_v46, %s3024_s20  ;;  %v2885_v16 = vpack.i.bf16 %v1786_v12, %v1761_v63  ;;  %v1790_v46 = vld [vmem:[#allocation4 + $0x91] sm:$0xff] }
 0x373   : > { %v3741_v36 = vld [vmem:[#allocation4 + $0x60] sm:$0xff] }
 0x374   : > { %1724 = vst.msk [vmem:[#allocation4 + $0x71] sm:$0xff] %vm334_vm0, %v1711_v24  ;;  %v1649_v56 = vadd.f32 %v2440_v54, %v3664_v61  ;;  %v2880_v61 = vpack.i.bf16 %v3729_v3, %v3706_v32  ;;  %v2905_v28 = vpack.i.bf16 %v3741_v36, %v3729_v3  ;;  %v1740_v17 = vld [vmem:[#allocation4 + $0x61] sm:$0xff] }
 0x375   : > { %v2910_v21 = vpack.i.bf16 %v1740_v17, %v1786_v12  ;;  %v1748_v19 = vld [vmem:[#allocation4 + $0x62] sm:$0xff] }
 0x376   : > { %v1714_v14 = vadd.f32 %v2491_v49, %v1649_v56  ;;  %2876 = vrot.lane.b32.xlu1 %v2875_v9, %s3022_s11  ;;  %2861 = vrot.lane.b32.xlu0 %v2845_v23, %s3025_s21  ;;  %v2915_v31 = vpack.i.bf16 %v1748_v19, %v1794_v10 }
 0x378   : > { %1725 = vst.msk [vmem:[#allocation4 + $0x81] sm:$0xff] %vm334_vm0, %v1714_v14 }
 0x37a   : > { %2881 = vrot.lane.b32.xlu1 %v2880_v61, %s3023_s15  ;;  %2896 = vrot.lane.b32.xlu0 %v2895_v15, %s3025_s21 }
 0x37b   : > { %v1741_v20 = vld [vmem:[#allocation4 + $0x71] sm:$0xff] }
 0x37c   : > { %v2920_v18 = vpack.i.bf16 %v1741_v20, %v1740_v17  ;;  %v1749_v22 = vld [vmem:[#allocation4 + $0x72] sm:$0xff] }
 0x37d   : > { %v2925_v30 = vpack.i.bf16 %v1749_v22, %v1748_v19  ;;  %v3751_v34 = vld [vmem:[#allocation4 + $0x70] sm:$0xff] }
 0x37e   : > { %2886 = vrot.lane.b32.xlu1 %v2885_v16, %s3024_s20  ;;  %2901 = vrot.lane.b32.xlu0 %v2895_v15, %s3018_s18  ;;  %v2930_v41 = vpack.i.bf16 %v3751_v34, %v3741_v36 }
 0x37f   : > { %v1757_v39 = vld [vmem:[#allocation4 + $0x80] sm:$0xff] }
 0x380   : > { %v2940_v40 = vpack.i.bf16 %v1757_v39, %v3751_v34  ;;  %v1765_v42 = vld [vmem:[#allocation4 + $0x81] sm:$0xff]  ;;  %v2955_v26 = vpack.i.bf16 %v1782_v45, %v1757_v39 }
 0x381   : > { %v2945_v43 = vpack.i.bf16 %v1765_v42, %v1741_v20  ;;  %v1773_v25 = vld [vmem:[#allocation4 + $0x82] sm:$0xff]  ;;  %v2960_v47 = vpack.i.bf16 %v1790_v46, %v1765_v42 }
 0x382   : > { %2891 = vrot.lane.b32.xlu1 %v2885_v16, %s3019_s19  ;;  %2906 = vrot.lane.b32.xlu0 %v2905_v28, %s3020_s24  ;;  %v2950_v44 = vpack.i.bf16 %v1773_v25, %v1749_v22  ;;  %v2970_v49 = vpack.i.bf16 %v1798_v48, %v1773_v25 }
 0x386   : > { %2921 = vrot.lane.b32.xlu1 %v2920_v18, %s3019_s19  ;;  %2911 = vrot.lane.b32.xlu0 %v2910_v21, %s3021_s27 }
 0x38a   : > { %2926 = vrot.lane.b32.xlu1 %v2925_v30, %s3018_s18  ;;  %2916 = vrot.lane.b32.xlu0 %v2915_v31, %s3022_s11 }
 0x38e   : > { %2941 = vrot.lane.b32.xlu1 %v2940_v40, %s3020_s24  ;;  %2931 = vrot.lane.b32.xlu0 %v2930_v41, %s3023_s15 }
 0x392   : > { %2946 = vrot.lane.b32.xlu1 %v2945_v43, %s3021_s27  ;;  %2936 = vrot.lane.b32.xlu0 %v2920_v18, %s3024_s20 }
 0x396   : > { %2951 = vrot.lane.b32.xlu1 %v2950_v44, %s3022_s11  ;;  %2966 = vrot.lane.b32.xlu0 %v2925_v30, %s3025_s21  ;;  %s332_s11 = scalar_lea.vmem %s3870_s9, %s2388_s12 }
 0x39a   : > { %2956 = vrot.lane.b32.xlu1 %v2955_v26, %s3023_s15 }
 0x39e   : > { %2961 = vrot.lane.b32.xlu1 %v2960_v47, %s3024_s20 }
 0x3a2   : > { %2971 = vrot.lane.b32.xlu1 %v2970_v49, %s3025_s21 }
 0x3cc   : > { %v2817_v50 = vpop.permute.xlu0 %2816 }
 0x3cd   : > { %v2819_v37 = vunpack.i.h.bf16 %v2817_v50  ;;  %v2818_v53 = vunpack.i.l.bf16 %v2817_v50 }
 0x3cf   : > { %v2055_v0 = vsel %vm334_vm0, %v1726_v57, %v2818_v53  ;;  %v2056_v4 = vsel %vm334_vm0, %v3684_v35, %v2819_v37 }
 0x3d0   : > { %v2822_v51 = vpop.permute.xlu0 %2821 }
 0x3d1   : > { %v2824_v58 = vunpack.i.h.bf16 %v2822_v51  ;;  %v2823_v59 = vunpack.i.l.bf16 %v2822_v51 }
 0x3d3   : > { %v2063_v24 = vsel %vm769_vm5, %v2055_v0, %v2823_v59  ;;  %v2064_v54 = vsel %vm769_vm5, %v2056_v4, %v2824_v58 }
 0x3d4   : > { %v2827_v27 = vpop.permute.xlu0 %2826 }
 0x3d5   : > { %v2829_v60 = vunpack.i.h.bf16 %v2827_v27  ;;  %v2828_v62 = vunpack.i.l.bf16 %v2827_v27 }
 0x3d7   : > { %v2071_v10 = vsel %vm778_vm6, %v2063_v24, %v2828_v62  ;;  %v2072_v13 = vsel %vm778_vm6, %v2064_v54, %v2829_v60 }
 0x3d8   : > { %v2842_v11 = vpop.permute.xlu1 %2841  ;;  %v2832_v52 = vpop.permute.xlu0 %2831 }
 0x3d9   : > { %v2834_v63 = vunpack.i.h.bf16 %v2832_v52  ;;  %v2833_v1 = vunpack.i.l.bf16 %v2832_v52  ;;  %v2844_v12 = vunpack.i.h.bf16 %v2842_v11  ;;  %v2843_v16 = vunpack.i.l.bf16 %v2842_v11 }
 0x3db   : > { %v2079_v15 = vsel %vm787_vm7, %v2071_v10, %v2833_v1  ;;  %v2080_v35 = vsel %vm787_vm7, %v2072_v13, %v2834_v63  ;;  %v2058_v49 = vsel %vm334_vm0, %v3704_v55, %v2844_v12  ;;  %v2057_v50 = vsel %vm334_vm0, %v3679_v29, %v2843_v16 }
 0x3dc   : > { %v2847_v8 = vpop.permute.xlu1 %2846  ;;  %v2837_v23 = vpop.permute.xlu0 %2836 }
 0x3dd   : > { %v2839_v2 = vunpack.i.h.bf16 %v2837_v23  ;;  %v2838_v5 = vunpack.i.l.bf16 %v2837_v23  ;;  %v2849_v31 = vunpack.i.h.bf16 %v2847_v8  ;;  %v2848_v39 = vunpack.i.l.bf16 %v2847_v8 }
 0x3df   : > { %v2087_v28 = vsel %vm796_vm8, %v2079_v15, %v2838_v5  ;;  %v2088_v17 = vsel %vm796_vm8, %v2080_v35, %v2839_v2  ;;  %v2065_v11 = vsel %vm769_vm5, %v2057_v50, %v2848_v39  ;;  %v2066_v52 = vsel %vm769_vm5, %v2058_v49, %v2849_v31 }
 0x3e0   : > { %v2867_v33 = vpop.permute.xlu1 %2866  ;;  %v2852_v7 = vpop.permute.xlu0 %2851 }
 0x3e1   : > { %v2854_v56 = vunpack.i.h.bf16 %v2852_v7  ;;  %v2853_v9 = vunpack.i.l.bf16 %v2852_v7  ;;  %v2869_v42 = vunpack.i.h.bf16 %v2867_v33  ;;  %v2868_v43 = vunpack.i.l.bf16 %v2867_v33 }
 0x3e3   : > { %v2095_v21 = vsel %vm805_vm9, %v2087_v28, %v2853_v9  ;;  %v2096_v19 = vsel %vm805_vm9, %v2088_v17, %v2854_v56  ;;  %v2073_v37 = vsel %vm778_vm6, %v2065_v11, %v2868_v43  ;;  %v2074_v53 = vsel %vm778_vm6, %v2066_v52, %v2869_v42 }
 0x3e4   : > { %v2872_v38 = vpop.permute.xlu1 %2871  ;;  %v2857_v6 = vpop.permute.xlu0 %2856 }
 0x3e5   : > { %v2859_v14 = vunpack.i.h.bf16 %v2857_v6  ;;  %v2858_v61 = vunpack.i.l.bf16 %v2857_v6  ;;  %v2874_v45 = vunpack.i.h.bf16 %v2872_v38  ;;  %v2873_v26 = vunpack.i.l.bf16 %v2872_v38 }
 0x3e7   : > { %v2103_v40 = vsel %vm814_vm10, %v2095_v21, %v2858_v61  ;;  %v2104_v41 = vsel %vm814_vm10, %v2096_v19, %v2859_v14  ;;  %v2081_v33 = vsel %vm787_vm7, %v2073_v37, %v2873_v26  ;;  %v2082_v55 = vsel %vm787_vm7, %v2074_v53, %v2874_v45 }
 0x3e8   : > { %v2877_v20 = vpop.permute.xlu1 %2876  ;;  %v2862_v18 = vpop.permute.xlu0 %2861 }
 0x3e9   : > { %v2864_v22 = vunpack.i.h.bf16 %v2862_v18  ;;  %v2863_v30 = vunpack.i.l.bf16 %v2862_v18  ;;  %v2879_v51 = vunpack.i.h.bf16 %v2877_v20  ;;  %v2878_v27 = vunpack.i.l.bf16 %v2877_v20 }
 0x3eb   : > { %v2111_v25 = vsel %vm823_vm11, %v2103_v40, %v2863_v30  ;;  %v2112_v44 = vsel %vm823_vm11, %v2104_v41, %v2864_v22  ;;  %v2089_v57 = vsel %vm796_vm8, %v2081_v33, %v2878_v27  ;;  %v2090_v58 = vsel %vm796_vm8, %v2082_v55, %v2879_v51 }
 0x3ec   : > { %v2119_v46 = vpack.c.bf16 %v2112_v44, %v2111_v25  ;;  %v2882_v47 = vpop.permute.xlu1 %2881  ;;  %v2897_v48 = vpop.permute.xlu0 %2896 }
 0x3ed   : > { %v2884_v8 = vunpack.i.h.bf16 %v2882_v47  ;;  %v2883_v23 = vunpack.i.l.bf16 %v2882_v47  ;;  %v2899_v1 = vunpack.i.h.bf16 %v2897_v48  ;;  %v2898_v0 = vunpack.i.l.bf16 %v2897_v48 }
 0x3ee   : > { %2506 = vmatprep.mubr.msk.bf16.mxu1 %vm898_vm12, %v2119_v46 }
 0x3ef   : > { %v2097_v62 = vsel %vm805_vm9, %v2089_v57, %v2883_v23  ;;  %v2098_v63 = vsel %vm805_vm9, %v2090_v58, %v2884_v8 }
 0x3f0   : > { %v2887_v7 = vpop.permute.xlu1 %2886  ;;  %v2902_v29 = vpop.permute.xlu0 %2901 }
 0x3f1   : > { %v2889_v59 = vunpack.i.h.bf16 %v2887_v7  ;;  %v2888_v60 = vunpack.i.l.bf16 %v2887_v7  ;;  %v2904_v12 = vunpack.i.h.bf16 %v2902_v29  ;;  %v2903_v16 = vunpack.i.l.bf16 %v2902_v29 }
 0x3f3   : > { %v2105_v4 = vsel %vm814_vm10, %v2097_v62, %v2888_v60  ;;  %v2106_v2 = vsel %vm814_vm10, %v2098_v63, %v2889_v59 }
 0x3f4   : > { %v2113_v5 = vsel %vm823_vm11, %v2105_v4, %v2898_v0  ;;  %v2114_v38 = vsel %vm823_vm11, %v2106_v2, %v2899_v1  ;;  %v2892_v6 = vpop.permute.xlu1 %2891  ;;  %v2907_v24 = vpop.permute.xlu0 %2906 }
 0x3f5   : > { %v2120_v54 = vpack.c.bf16 %v2114_v38, %v2113_v5  ;;  %v2894_v10 = vunpack.i.h.bf16 %v2892_v6  ;;  %v2893_v13 = vunpack.i.l.bf16 %v2892_v6  ;;  %v2909_v21 = vunpack.i.h.bf16 %v2907_v24 }
 0x3f6   : > { %v2908_v19 = vunpack.i.l.bf16 %v2907_v24 }
 0x3f7   : > { %2507 = vmatmul.mubr.msk.bf16.vlgmr.msra.gmra.mxu1 %vm898_vm12, %v2120_v54  ;;  %v2060_v15 = vsel %vm334_vm0, %v3729_v3, %v2894_v10  ;;  %v2059_v35 = vsel %vm334_vm0, %v3706_v32, %v2893_v13 }
 0x3f8   : > { %v2922_v56 = vpop.permute.xlu1 %2921  ;;  %v2912_v9 = vpop.permute.xlu0 %2911  ;;  %v2067_v20 = vsel %vm769_vm5, %v2059_v35, %v2903_v16  ;;  %v2068_v18 = vsel %vm769_vm5, %v2060_v15, %v2904_v12 }
 0x3f9   : > { %v2914_v22 = vunpack.i.h.bf16 %v2912_v9  ;;  %v2913_v30 = vunpack.i.l.bf16 %v2912_v9  ;;  %v2075_v31 = vsel %vm778_vm6, %v2067_v20, %v2908_v19  ;;  %v2076_v39 = vsel %vm778_vm6, %v2068_v18, %v2909_v21  ;;  %v2374_v19 = vld [vmem:[%s3869_s8] ss:$0 sm:$0xff] }
 0x3fa   : > { %v2924_v53 = vunpack.i.h.bf16 %v2922_v56  ;;  %v2923_v33 = vunpack.i.l.bf16 %v2922_v56 }
 0x3fb   : > { %v2083_v45 = vsel %vm787_vm7, %v2075_v31, %v2913_v30  ;;  %v2084_v26 = vsel %vm787_vm7, %v2076_v39, %v2914_v22 }
 0x3fc   : > { %v2927_v14 = vpop.permute.xlu1 %2926  ;;  %v2917_v61 = vpop.permute.xlu0 %2916  ;;  %v2062_v63 = vsel %vm334_vm0, %v3751_v34, %v2924_v53  ;;  %v2061_v1 = vsel %vm334_vm0, %v3741_v36, %v2923_v33 }
 0x3fd   : > { %v2919_v3 = vunpack.i.h.bf16 %v2917_v61  ;;  %v2918_v40 = vunpack.i.l.bf16 %v2917_v61  ;;  %v2929_v29 = vunpack.i.h.bf16 %v2927_v14  ;;  %v2928_v57 = vunpack.i.l.bf16 %v2927_v14 }
 0x3ff   : > { %v2091_v46 = vsel %vm796_vm8, %v2083_v45, %v2918_v40  ;;  %v2092_v47 = vsel %vm796_vm8, %v2084_v26, %v2919_v3  ;;  %v2069_v5 = vsel %vm769_vm5, %v2061_v1, %v2928_v57  ;;  %v2070_v38 = vsel %vm769_vm5, %v2062_v63, %v2929_v29 }
 0x400   : > { %v2942_v28 = vpop.permute.xlu1 %2941  ;;  %v2932_v17 = vpop.permute.xlu0 %2931 }
 0x401   : > { %v2934_v42 = vunpack.i.h.bf16 %v2932_v17  ;;  %v2933_v43 = vunpack.i.l.bf16 %v2932_v17  ;;  %v2944_v58 = vunpack.i.h.bf16 %v2942_v28  ;;  %v2943_v59 = vunpack.i.l.bf16 %v2942_v28 }
 0x403   : > { %v2099_v50 = vsel %vm805_vm9, %v2091_v46, %v2933_v43  ;;  %v2100_v51 = vsel %vm805_vm9, %v2092_v47, %v2934_v42  ;;  %v2077_v54 = vsel %vm778_vm6, %v2069_v5, %v2943_v59  ;;  %v2078_v56 = vsel %vm778_vm6, %v2070_v38, %v2944_v58 }
 0x404   : > { %v2947_v41 = vpop.permute.xlu1 %2946  ;;  %v2937_v32 = vpop.permute.xlu0 %2936 }
 0x405   : > { %v2939_v25 = vunpack.i.h.bf16 %v2937_v32  ;;  %v2938_v44 = vunpack.i.l.bf16 %v2937_v32  ;;  %v2949_v60 = vunpack.i.h.bf16 %v2947_v41  ;;  %v2948_v62 = vunpack.i.l.bf16 %v2947_v41 }
 0x407   : > { %v2107_v52 = vsel %vm814_vm10, %v2099_v50, %v2938_v44  ;;  %v2108_v8 = vsel %vm814_vm10, %v2100_v51, %v2939_v25  ;;  %v2085_v34 = vsel %vm787_vm7, %v2077_v54, %v2948_v62  ;;  %v2086_v36 = vsel %vm787_vm7, %v2078_v56, %v2949_v60 }
 0x408   : > { %v2952_v48 = vpop.permute.xlu1 %2951  ;;  %v2967_v49 = vpop.permute.xlu0 %2966 }
 0x409   : > { %v2969_v27 = vunpack.i.h.bf16 %v2967_v49  ;;  %v2968_v11 = vunpack.i.l.bf16 %v2967_v49  ;;  %v2954_v0 = vunpack.i.h.bf16 %v2952_v48  ;;  %v2953_v4 = vunpack.i.l.bf16 %v2952_v48 }
 0x40b   : > { %v2115_v23 = vsel %vm823_vm11, %v2107_v52, %v2968_v11  ;;  %v2116_v37 = vsel %vm823_vm11, %v2108_v8, %v2969_v27  ;;  %v2093_v13 = vsel %vm796_vm8, %v2085_v34, %v2953_v4  ;;  %v2094_v14 = vsel %vm796_vm8, %v2086_v36, %v2954_v0 }
 0x40c   : > { %v2121_v55 = vpack.c.bf16 %v2116_v37, %v2115_v23  ;;  %v2957_v7 = vpop.permute.xlu1 %2956 }
 0x40d   : > { %v2959_v6 = vunpack.i.h.bf16 %v2957_v7  ;;  %v2958_v24 = vunpack.i.l.bf16 %v2957_v7 }
 0x40e   : > { %2510 = vmatprep.mubr.msk.bf16.mxu1 %vm898_vm12, %v2121_v55 }
 0x40f   : > { %v2101_v15 = vsel %vm805_vm9, %v2093_v13, %v2958_v24  ;;  %v2102_v35 = vsel %vm805_vm9, %v2094_v14, %v2959_v6 }
 0x410   : > { %v2962_v2 = vpop.permute.xlu1 %2961 }
 0x411   : > { %v2964_v9 = vunpack.i.h.bf16 %v2962_v2  ;;  %v2963_v10 = vunpack.i.l.bf16 %v2962_v2 }
 0x413   : > { %v2109_v28 = vsel %vm814_vm10, %v2101_v15, %v2963_v10  ;;  %v2110_v17 = vsel %vm814_vm10, %v2102_v35, %v2964_v9 }
 0x414   : > { %v2972_v61 = vpop.permute.xlu1 %2971 }
 0x415   : > { %v2974_v12 = vunpack.i.h.bf16 %v2972_v61  ;;  %v2973_v16 = vunpack.i.l.bf16 %v2972_v61 }
 0x417   : > { %v2117_v20 = vsel %vm823_vm11, %v2109_v28, %v2973_v16  ;;  %v2118_v18 = vsel %vm823_vm11, %v2110_v17, %v2974_v12 }
 0x418   : > { %v2122_v21 = vpack.c.bf16 %v2118_v18, %v2117_v20 }
 0x41a   : > { %2511 = vmatmul.mubr.msk.bf16.gmra.mxu1 %vm898_vm12, %v2122_v21 }
 0x4b7   : > { %v2508_v22 = vpop.f32.mrf.mxu1 }
 0x4b8   : > { %v2243_v30 = vadd.f32 %v2508_v22, %v2374_v19 }
 0x4b9   : > { %v2234_v31 = vpop.f32.mrf.mxu1 }
 0x4ba   : > { %2267 = vst.msk [vmem:[%s332_s11 + $0x10] sm:$0xff] %vm334_vm0, %v2243_v30  ;;  %v2235_v39 = vadd.f32 %v2374_v19, %v2234_v31 }
 0x4bb   : > { %v2509_v3 = vpop.f32.mrf.mxu1 }
 0x4bc   : > { %2265 = vst.msk [vmem:[%s332_s11] sm:$0xff] %vm334_vm0, %v2235_v39  ;;  %v2246_v40 = vadd.f32 %v2509_v3, %v2374_v19 }
 0x4bd   : > { %v2237_v41 = vpop.f32.mrf.mxu1 }
 0x4be   : > { %2268 = vst.msk [vmem:[%s332_s11 + $0x18] sm:$0xff] %vm334_vm0, %v2246_v40  ;;  %v2238_v32 = vadd.f32 %v2374_v19, %v2237_v41 }
 0x4c0   : > { %2266 = vst.msk [vmem:[%s332_s11 + $0x8] sm:$0xff] %vm334_vm0, %v2238_v32 }
 0x4da   : > { %v2512_v42 = vpop.f32.mrf.mxu1 }
 0x4db   : > { %v2259_v43 = vadd.f32 %v2512_v42, %v2374_v19 }
 0x4dc   : > { %v2250_v25 = vpop.f32.mrf.mxu1 }
 0x4dd   : > { %2271 = vst.msk [vmem:[%s332_s11 + $0x30] sm:$0xff] %vm334_vm0, %v2259_v43  ;;  %v2251_v44 = vadd.f32 %v2374_v19, %v2250_v25 }
 0x4de   : > { %v2513_v45 = vpop.f32.mrf.mxu1 }
 0x4df   : > { %2269 = vst.msk [vmem:[%s332_s11 + $0x20] sm:$0xff] %vm334_vm0, %v2251_v44  ;;  %v2262_v26 = vadd.f32 %v2513_v45, %v2374_v19 }
 0x4e0   : > { %v2253_v46 = vpop.f32.mrf.mxu1 }
 0x4e1   : > { %2272 = vst.msk [vmem:[%s332_s11 + $0x38] sm:$0xff] %vm334_vm0, %v2262_v26  ;;  %v2254_v47 = vadd.f32 %v2374_v19, %v2253_v46 }
 0x4e3   : > { %2270 = vst.msk [vmem:[%s332_s11 + $0x28] sm:$0xff] %vm334_vm0, %v2254_v47 }
 0x4e4 PF: > { %s19_s30 = sadd.s32 1, %s3015_s30  }
 0x4e5   : > { %p16_p4 = scmp.ge.s32.totalorder %s19_s30, 4  }
 0x4e7   :  { %18 = sbr.rel (!%p16_p4) target bundleno = 1 (0x1), region = 95 }

</bundles_post_ra>
